<compile_context>
chip_gen: v7x
topology: tpu7x:2x2x1
jax: 0.10.0
libtpu: 0.0.40
codegen_flags: <defaults>
</compile_context>

<pallas_src>
import functools
import math

import jax
import jax.numpy as jnp
import numpy as np
from jax.experimental import pallas as pl
from jax.experimental.pallas import tpu as pltpu


# ---------------------------------------------------------------------------
# Kernel
# ---------------------------------------------------------------------------
def _fused_kernel(*refs, layer_cfgs):
    """Fused abs -> conv1 -> relu -> conv2 -> relu -> conv3 for one batch tile.

    refs = (x_ref, [band, bias, masks(, eo_sel)] per layer ..., o_ref)

    x_ref  : (B*Hin, Win*Cin)          lane-dense activations, row = b*H + y
    band   : (K*Win*Cin, Wout*Cout)    stacked banded weights (one block per kh)
    bias   : (1, Wout*Cout)            bias tiled along the W axis
    masks  : (K, B*Hout, 1)            f32 validity mask per tap (H zero pad)
    eo_sel : (2*B*Hout, B*Hin)         0/1 even/odd row decimation (stride-2)
    o_ref  : (B*Hout3, lane-padded Wout3*Cout3)
    """
    x_ref, o_ref = refs[0], refs[-1]
    wrefs = refs[1:-1]

    # abs() applied exactly once, before any conv (hoisted out of all taps).
    act = jnp.abs(x_ref[...].astype(jnp.float32))

    ri = 0
    n_layers = len(layer_cfgs)
    for li, (has_eo, taps) in enumerate(layer_cfgs):
        band_ref, bias_ref, mask_ref = wrefs[ri], wrefs[ri + 1], wrefs[ri + 2]
        ri += 3

        if has_eo:
            # Stride-2 layer: one small 0/1 matmul splits the rows into the
            # even/odd sets needed by the vertical taps (exact data movement).
            sel_ref = wrefs[ri]
            ri += 1
            eo = jnp.dot(sel_ref[...], act, preferred_element_type=jnp.float32)
            m_out = eo.shape[0] // 2
            sources = (None, eo[:m_out], eo[m_out:])
        else:
            sources = (act, None, None)

        # Gather the K vertical taps with XLU sublane rolls + boundary masks,
        # then contract all taps in ONE wide MXU matmul against the stacked
        # banded weights (which fold W-taps, W-stride, W-pad and channels).
        pieces = []
        for t, (src_id, shift) in enumerate(taps):
            src = sources[src_id]
            nrows = src.shape[0]
            s = (-shift) % nrows            # row r of piece <- src[(r+shift) % n]
            piece = pltpu.roll(src, shift=s, axis=0) if s else src
            if shift != 0:                  # zero out rows that fall in H padding
                piece = piece * mask_ref[t]
            pieces.append(piece)
        rows_all = jnp.concatenate(pieces, axis=-1)        # (M, K*Win*Cin)

        acc = jnp.dot(rows_all, band_ref[...],
                      preferred_element_type=jnp.float32)  # (M, Wout*Cout)
        acc = acc + bias_ref[...]
        if li < n_layers - 1:               # ReLU after conv1 and conv2 only
            acc = jnp.maximum(acc, 0.0)
        act = acc

    o_ref[...] = act.astype(o_ref.dtype)


# ---------------------------------------------------------------------------
# Host-side weight / mask preparation
# ---------------------------------------------------------------------------
def _stacked_band_weight(w_oihw, win, stride, pad, pad_cols_to=None):
    """Torch OIHW weight -> (K*Win*Cin, Wout*Cout) stacked banded matrix.

    band[kh*Win*Cin + wi*Cin + ci, j*Cout + co] = W[kh, kw, ci, co]
    with wi = stride*j + kw - pad (zero where wi is outside [0, Win)), so a
    single matmul performs the W taps, W stride, W padding and the channel
    contraction for vertical tap kh.
    """
    w = np.transpose(np.asarray(w_oihw, np.float32), (2, 3, 1, 0))  # (K,K,Ci,Co)
    k, _, cin, cout = w.shape
    wout = (win + 2 * pad - k) // stride + 1
    band = np.zeros((k, win * cin, wout * cout), np.float32)
    for kh in range(k):
        for j in range(wout):
            for kw in range(k):
                wi = stride * j + kw - pad
                if 0 <= wi < win:
                    band[kh, wi * cin:(wi + 1) * cin,
                         j * cout:(j + 1) * cout] = w[kh, kw]
    band = band.reshape(k * win * cin, wout * cout)
    if pad_cols_to is not None and band.shape[1] < pad_cols_to:
        band = np.pad(band, ((0, 0), (0, pad_cols_to - band.shape[1])))
    return band, wout


def _taps(ksize, stride, pad):
    """Per vertical tap: (source id, row shift). source: 0=rows, 1=even, 2=odd."""
    taps = []
    for kh in range(ksize):
        d = kh - pad
        if stride == 1:
            taps.append((0, d))
        elif d % 2 == 0:
            taps.append((1, d // 2))
        else:
            taps.append((2, (d - 1) // 2))
    return tuple(taps)


def _tap_masks(taps, b_tile, hout):
    """(K, B*Hout, 1) f32 masks implementing the per-image H zero padding."""
    m_out = b_tile * hout
    i_img = np.arange(m_out) % hout
    masks = np.zeros((len(taps), m_out, 1), np.float32)
    for t, (_, shift) in enumerate(taps):
        masks[t, :, 0] = (i_img + shift >= 0) & (i_img + shift < hout)
    return masks


def _even_odd_selector(b_tile, hin, hout):
    """0/1 matrix [E; O]: E[s] = act[2s], O[s] = act[2s+1] (Hin = 2*Hout)."""
    m_in, m_out = b_tile * hin, b_tile * hout
    sel = np.zeros((2 * m_out, m_in), np.float32)
    r = np.arange(m_out)
    sel[r, 2 * r] = 1.0
    sel[m_out + r, 2 * r + 1] = 1.0
    return sel


# ---------------------------------------------------------------------------
# Wrapper
# ---------------------------------------------------------------------------
def hyper_analysis_transformation_2d(x_nchw, params, in_channels=3, b_tile=None):
    """Pallas forward. Input/output are NCHW, matching the PyTorch module."""
    n, cin, h, w = x_nchw.shape
    k1 = in_channels
    assert k1 % 2 == 1, "first conv kernel size (= in_channels) must be odd"
    assert h % 4 == 0, "H must be divisible by 4 (two stride-2 convs)"

    layers = [
        (params["w1"], params["b1"], k1, 1, k1 // 2),  # Cin  -> Cmid, KxK, s1
        (params["w2"], params["b2"], 5, 2, 2),          # Cmid -> Cmid, 5x5, s2
        (params["w3"], params["b3"], 5, 2, 2),          # Cmid -> Cout, 5x5, s2
    ]
    h_fin = h // 4

    # Batch tile: rows of B_TILE images are flattened into the matmul M dim.
    # Keep the per-step output row count a multiple of 8 sublanes.
    if b_tile is None:
        b_tile = max(1, min(n, 8))
    step = 8 // math.gcd(h_fin, 8)
    b_tile = ((b_tile + step - 1) // step) * step
    n_pad = ((n + b_tile - 1) // b_tile) * b_tile
    if n_pad != n:
        x_nchw = jnp.concatenate(
            [x_nchw, jnp.zeros((n_pad - n, cin, h, w), x_nchw.dtype)], axis=0)

    # Lane-dense activation matrix: row = b*H + y, lane = x*Cin + c.
    x_mat = jnp.transpose(x_nchw, (0, 2, 3, 1)).reshape(n_pad * h, w * cin)

    operands = [x_mat]
    in_specs = [pl.BlockSpec((b_tile * h, w * cin), lambda i: (i, 0))]

    def _const_spec(arr):
        # Constant index map: block is DMA'd once and stays resident across
        # grid steps.  (pl.Buffered(1) could drop the second buffer once the
        # weights grow; negligible at these sizes.)
        nd = arr.ndim
        return pl.BlockSpec(arr.shape, lambda i, _nd=nd: (0,) * _nd)

    layer_cfgs = []
    hin, win = h, w
    wc_out_pad = c_fin = w_fin = None
    for li, (wgt, bias, ksize, stride, pad) in enumerate(layers):
        cout = wgt.shape[0]
        hout = (hin + 2 * pad - ksize) // stride + 1
        wout = (win + 2 * pad - ksize) // stride + 1
        wc_out = wout * cout
        is_last = li == len(layers) - 1
        # Lane-dense output: pad the final layer's columns to a multiple of
        # 128 so the HBM store is an unmasked full-lane store.
        pad_to = ((wc_out + 127) // 128) * 128 if is_last else None

        band, wout2 = _stacked_band_weight(wgt, win, stride, pad,
                                           pad_cols_to=pad_to)
        assert wout2 == wout
        bias_cols = pad_to if is_last else wc_out
        bias_row = np.zeros((1, bias_cols), np.float32)
        bias_row[0, :wc_out] = np.tile(np.asarray(bias, np.float32), wout)

        taps = _taps(ksize, stride, pad)
        masks = _tap_masks(taps, b_tile, hout)

        for arr in (band, bias_row, masks):
            arr = jnp.asarray(arr)
            operands.append(arr)
            in_specs.append(_const_spec(arr))
        if stride == 2:
            sel = jnp.asarray(_even_odd_selector(b_tile, hin, hout))
            operands.append(sel)
            in_specs.append(_const_spec(sel))

        layer_cfgs.append((stride == 2, taps))
        if is_last:
            wc_out_pad, c_fin, w_fin = bias_cols, cout, wout
        hin, win = hout, wout

    kernel = functools.partial(_fused_kernel, layer_cfgs=tuple(layer_cfgs))

    out2d = pl.pallas_call(
        kernel,
        out_shape=jax.ShapeDtypeStruct((n_pad * h_fin, wc_out_pad), x_nchw.dtype),
        grid=(n_pad // b_tile,),
        in_specs=in_specs,
        out_specs=pl.BlockSpec((b_tile * h_fin, wc_out_pad), lambda i: (i, 0)),
        compiler_params=pltpu.CompilerParams(
            dimension_semantics=("parallel",),
            vmem_limit_bytes=32 * 1024 * 1024),
    )(*operands)

    out = out2d[:, :w_fin * c_fin].reshape(n_pad, h_fin, w_fin, c_fin)
    return jnp.transpose(out, (0, 3, 1, 2))[:n]


# ---------------------------------------------------------------------------
# Parameters / reference
# ---------------------------------------------------------------------------
def init_params(key, network_channels, compression_channels, in_channels):
    """Deterministic synthetic parameters (PyTorch OIHW shapes)."""
    k1, k2, k3, k4, k5, k6 = jax.random.split(key, 6)
    K = in_channels
    return {
        "w1": 0.1 * jax.random.normal(
            k1, (network_channels, compression_channels, K, K), jnp.float32),
        "b1": 0.1 * jax.random.normal(k2, (network_channels,), jnp.float32),
        "w2": 0.1 * jax.random.normal(
            k3, (network_channels, network_channels, 5, 5), jnp.float32),
        "b2": 0.1 * jax.random.normal(k4, (network_channels,), jnp.float32),
        "w3": 0.1 * jax.random.normal(
            k5, (network_channels, network_channels, 5, 5), jnp.float32),
        "b3": 0.1 * jax.random.normal(k6, (network_channels,), jnp.float32),
    }


def _reference_forward(x_nchw, params, in_channels=3):
    """Pure-JAX (XLA conv, HIGHEST precision) reference of the PyTorch forward."""
    dn = jax.lax.conv_dimension_numbers(x_nchw.shape, params["w1"].shape,
                                        ("NCHW", "OIHW", "NCHW"))
    hp = jax.lax.Precision.HIGHEST
    p = in_channels // 2
    x = jnp.abs(x_nchw)
    x = jax.lax.conv_general_dilated(x, params["w1"], (1, 1), ((p, p), (p, p)),
                                     dimension_numbers=dn, precision=hp)
    x = jnp.maximum(x + params["b1"][None, :, None, None], 0.0)
    x = jax.lax.conv_general_dilated(x, params["w2"], (2, 2), ((2, 2), (2, 2)),
                                     dimension_numbers=dn, precision=hp)
    x = jnp.maximum(x + params["b2"][None, :, None, None], 0.0)
    x = jax.lax.conv_general_dilated(x, params["w3"], (2, 2), ((2, 2), (2, 2)),
                                     dimension_numbers=dn, precision=hp)
    x = x + params["b3"][None, :, None, None]
    return x


if __name__ == "__main__":
    network_channels = 8
    compression_channels = 4
    in_channels = 3
    batch, spatial = 8, 16          # small, but enough to exercise batch tiling

    key = jax.random.PRNGKey(0)
    key_x, key_p = jax.random.split(key)

    x = jax.random.normal(key_x, (batch, compression_channels, spatial, spatial),
                          jnp.float32)
    params = init_params(key_p, network_channels, compression_channels, in_channels)

    # b_tile=4 -> grid=(2,): both TensorCores get a full batch tile each.
    out = hyper_analysis_transformation_2d(x, params, in_channels=in_channels,
                                           b_tile=4)
    out = jax.block_until_ready(out)

    ref = _reference_forward(x, params, in_channels=in_channels)
    assert out.shape == ref.shape == (batch, network_channels,
                                      spatial // 4, spatial // 4)
    err = jnp.max(jnp.abs(out - ref))
    # Kernel matmuls run at default (bf16-pass) MXU precision with f32
    # accumulation; tolerance loosened accordingly (reference is HIGHEST).
    assert jnp.allclose(out, ref, atol=3e-2, rtol=3e-2), f"max abs err {err}"

    print("KERNEL_OK")
</pallas_src>

<mosaic_0001>
module attributes {stable_mosaic.version = 11 : i64} {
  func.func @_fused_kernel(%arg0: i32, %arg1: memref<64x64xf32, #tpu.memory_space<vmem>>, %arg2: memref<192x128xf32, #tpu.memory_space<vmem>>, %arg3: memref<1x128xf32, #tpu.memory_space<vmem>>, %arg4: memref<3x64x1xf32, #tpu.memory_space<vmem>>, %arg5: memref<640x64xf32, #tpu.memory_space<vmem>>, %arg6: memref<1x64xf32, #tpu.memory_space<vmem>>, %arg7: memref<5x32x1xf32, #tpu.memory_space<vmem>>, %arg8: memref<64x64xf32, #tpu.memory_space<vmem>>, %arg9: memref<320x128xf32, #tpu.memory_space<vmem>>, %arg10: memref<1x128xf32, #tpu.memory_space<vmem>>, %arg11: memref<5x16x1xf32, #tpu.memory_space<vmem>>, %arg12: memref<32x32xf32, #tpu.memory_space<vmem>>, %arg13: memref<16x128xf32, #tpu.memory_space<vmem>>) attributes {dimension_semantics = [#tpu.dimension_semantics<parallel>], iteration_bounds = array<i64: 2>, scalar_prefetch = 0 : i64, scratch_operands = 0 : i64, tpu.core_type = #tpu.core_type<tc>, window_params = [{transform_indices = @transform_0, window_bounds = array<i64: 64, 64>}, {pipeline_mode = #tpu.pipeline_mode<synchronous>, transform_indices = @transform_1, window_bounds = array<i64: 192, 128>}, {pipeline_mode = #tpu.pipeline_mode<synchronous>, transform_indices = @transform_2, window_bounds = array<i64: 1, 128>}, {pipeline_mode = #tpu.pipeline_mode<synchronous>, transform_indices = @transform_3, window_bounds = array<i64: 3, 64, 1>}, {pipeline_mode = #tpu.pipeline_mode<synchronous>, transform_indices = @transform_4, window_bounds = array<i64: 640, 64>}, {pipeline_mode = #tpu.pipeline_mode<synchronous>, transform_indices = @transform_5, window_bounds = array<i64: 1, 64>}, {pipeline_mode = #tpu.pipeline_mode<synchronous>, transform_indices = @transform_6, window_bounds = array<i64: 5, 32, 1>}, {pipeline_mode = #tpu.pipeline_mode<synchronous>, transform_indices = @transform_7, window_bounds = array<i64: 64, 64>}, {pipeline_mode = #tpu.pipeline_mode<synchronous>, transform_indices = @transform_8, window_bounds = array<i64: 320, 128>}, {pipeline_mode = #tpu.pipeline_mode<synchronous>, transform_indices = @transform_9, window_bounds = array<i64: 1, 128>}, {pipeline_mode = #tpu.pipeline_mode<synchronous>, transform_indices = @transform_10, window_bounds = array<i64: 5, 16, 1>}, {pipeline_mode = #tpu.pipeline_mode<synchronous>, transform_indices = @transform_11, window_bounds = array<i64: 32, 32>}, {transform_indices = @transform_12, window_bounds = array<i64: 16, 128>}]} {
    %c0 = arith.constant 0 : index
    %c0_0 = arith.constant 0 : index
    %0 = vector.load %arg1[%c0, %c0_0] : memref<64x64xf32, #tpu.memory_space<vmem>>, vector<64x64xf32>
    %1 = math.absf %0 : vector<64x64xf32>
    %c1_i32 = arith.constant 1 : i32
    %2 = tpu.dynamic_rotate %1 by %c1_i32 dim 0 : vector<64x64xf32>, i32 -> vector<64x64xf32>
    %c0_1 = arith.constant 0 : index
    %c0_2 = arith.constant 0 : index
    %c0_3 = arith.constant 0 : index
    %3 = vector.load %arg4[%c0_1, %c0_2, %c0_3] : memref<3x64x1xf32, #tpu.memory_space<vmem>>, vector<1x64x1xf32>
    %4 = vector.shape_cast %3 : vector<1x64x1xf32> to vector<64x1xf32>
    %5 = vector.broadcast %4 : vector<64x1xf32> to vector<64x64xf32>
    %6 = arith.mulf %2, %5 : vector<64x64xf32>
    %c63_i32 = arith.constant 63 : i32
    %7 = tpu.dynamic_rotate %1 by %c63_i32 dim 0 : vector<64x64xf32>, i32 -> vector<64x64xf32>
    %c2 = arith.constant 2 : index
    %c0_4 = arith.constant 0 : index
    %c0_5 = arith.constant 0 : index
    %8 = vector.load %arg4[%c2, %c0_4, %c0_5] : memref<3x64x1xf32, #tpu.memory_space<vmem>>, vector<1x64x1xf32>
    %9 = vector.shape_cast %8 : vector<1x64x1xf32> to vector<64x1xf32>
    %10 = vector.broadcast %9 : vector<64x1xf32> to vector<64x64xf32>
    %11 = arith.mulf %7, %10 : vector<64x64xf32>
    %12 = tpu.concatenate %6, %1, %11 in 1 : vector<64x64xf32>, vector<64x64xf32>, vector<64x64xf32> -> vector<64x192xf32>
    %c0_6 = arith.constant 0 : index
    %c0_7 = arith.constant 0 : index
    %13 = vector.load %arg2[%c0_6, %c0_7] : memref<192x128xf32, #tpu.memory_space<vmem>>, vector<192x128xf32>
    %cst = arith.constant dense<0.000000e+00> : vector<64x128xf32>
    %14 = tpu.matmul %12, %13, %cst {dimension_numbers = #tpu.dot_dimension_numbers<[1], [0], [0], [1], [0, 0, 1, 1], [], []>} : vector<64x192xf32>, vector<192x128xf32>, vector<64x128xf32> -> vector<64x128xf32>
    %c0_8 = arith.constant 0 : index
    %c0_9 = arith.constant 0 : index
    %15 = vector.load %arg3[%c0_8, %c0_9] : memref<1x128xf32, #tpu.memory_space<vmem>>, vector<1x128xf32>
    %16 = vector.broadcast %15 : vector<1x128xf32> to vector<64x128xf32>
    %17 = arith.addf %14, %16 : vector<64x128xf32>
    %cst_10 = arith.constant 0.000000e+00 : f32
    %18 = vector.broadcast %cst_10 : f32 to vector<64x128xf32>
    %19 = arith.maximumf %17, %18 : vector<64x128xf32>
    %c0_11 = arith.constant 0 : index
    %c0_12 = arith.constant 0 : index
    %20 = vector.load %arg8[%c0_11, %c0_12] : memref<64x64xf32, #tpu.memory_space<vmem>>, vector<64x64xf32>
    %cst_13 = arith.constant dense<0.000000e+00> : vector<64x128xf32>
    %21 = tpu.matmul %20, %19, %cst_13 {dimension_numbers = #tpu.dot_dimension_numbers<[1], [0], [0], [1], [0, 0, 1, 1], [], []>} : vector<64x64xf32>, vector<64x128xf32>, vector<64x128xf32> -> vector<64x128xf32>
    %22 = vector.extract_strided_slice %21 {offsets = [0, 0], sizes = [32, 128], strides = [1, 1]} : vector<64x128xf32> to vector<32x128xf32>
    %23 = vector.extract_strided_slice %21 {offsets = [32, 0], sizes = [32, 128], strides = [1, 1]} : vector<64x128xf32> to vector<32x128xf32>
    %c1_i32_14 = arith.constant 1 : i32
    %24 = tpu.dynamic_rotate %22 by %c1_i32_14 dim 0 : vector<32x128xf32>, i32 -> vector<32x128xf32>
    %c0_15 = arith.constant 0 : index
    %c0_16 = arith.constant 0 : index
    %c0_17 = arith.constant 0 : index
    %25 = vector.load %arg7[%c0_15, %c0_16, %c0_17] : memref<5x32x1xf32, #tpu.memory_space<vmem>>, vector<1x32x1xf32>
    %26 = vector.shape_cast %25 : vector<1x32x1xf32> to vector<32x1xf32>
    %27 = vector.broadcast %26 : vector<32x1xf32> to vector<32x128xf32>
    %28 = arith.mulf %24, %27 : vector<32x128xf32>
    %c1_i32_18 = arith.constant 1 : i32
    %29 = tpu.dynamic_rotate %23 by %c1_i32_18 dim 0 : vector<32x128xf32>, i32 -> vector<32x128xf32>
    %c1 = arith.constant 1 : index
    %c0_19 = arith.constant 0 : index
    %c0_20 = arith.constant 0 : index
    %30 = vector.load %arg7[%c1, %c0_19, %c0_20] : memref<5x32x1xf32, #tpu.memory_space<vmem>>, vector<1x32x1xf32>
    %31 = vector.shape_cast %30 : vector<1x32x1xf32> to vector<32x1xf32>
    %32 = vector.broadcast %31 : vector<32x1xf32> to vector<32x128xf32>
    %33 = arith.mulf %29, %32 : vector<32x128xf32>
    %c31_i32 = arith.constant 31 : i32
    %34 = tpu.dynamic_rotate %22 by %c31_i32 dim 0 : vector<32x128xf32>, i32 -> vector<32x128xf32>
    %c4 = arith.constant 4 : index
    %c0_21 = arith.constant 0 : index
    %c0_22 = arith.constant 0 : index
    %35 = vector.load %arg7[%c4, %c0_21, %c0_22] : memref<5x32x1xf32, #tpu.memory_space<vmem>>, vector<1x32x1xf32>
    %36 = vector.shape_cast %35 : vector<1x32x1xf32> to vector<32x1xf32>
    %37 = vector.broadcast %36 : vector<32x1xf32> to vector<32x128xf32>
    %38 = arith.mulf %34, %37 : vector<32x128xf32>
    %39 = tpu.concatenate %28, %33, %22, %23, %38 in 1 : vector<32x128xf32>, vector<32x128xf32>, vector<32x128xf32>, vector<32x128xf32>, vector<32x128xf32> -> vector<32x640xf32>
    %c0_23 = arith.constant 0 : index
    %c0_24 = arith.constant 0 : index
    %40 = vector.load %arg5[%c0_23, %c0_24] : memref<640x64xf32, #tpu.memory_space<vmem>>, vector<640x64xf32>
    %cst_25 = arith.constant dense<0.000000e+00> : vector<32x64xf32>
    %41 = tpu.matmul %39, %40, %cst_25 {dimension_numbers = #tpu.dot_dimension_numbers<[1], [0], [0], [1], [0, 0, 1, 1], [], []>} : vector<32x640xf32>, vector<640x64xf32>, vector<32x64xf32> -> vector<32x64xf32>
    %c0_26 = arith.constant 0 : index
    %c0_27 = arith.constant 0 : index
    %42 = vector.load %arg6[%c0_26, %c0_27] : memref<1x64xf32, #tpu.memory_space<vmem>>, vector<1x64xf32>
    %43 = vector.broadcast %42 : vector<1x64xf32> to vector<32x64xf32>
    %44 = arith.addf %41, %43 : vector<32x64xf32>
    %cst_28 = arith.constant 0.000000e+00 : f32
    %45 = vector.broadcast %cst_28 : f32 to vector<32x64xf32>
    %46 = arith.maximumf %44, %45 : vector<32x64xf32>
    %c0_29 = arith.constant 0 : index
    %c0_30 = arith.constant 0 : index
    %47 = vector.load %arg12[%c0_29, %c0_30] : memref<32x32xf32, #tpu.memory_space<vmem>>, vector<32x32xf32>
    %cst_31 = arith.constant dense<0.000000e+00> : vector<32x64xf32>
    %48 = tpu.matmul %47, %46, %cst_31 {dimension_numbers = #tpu.dot_dimension_numbers<[1], [0], [0], [1], [0, 0, 1, 1], [], []>} : vector<32x32xf32>, vector<32x64xf32>, vector<32x64xf32> -> vector<32x64xf32>
    %49 = vector.extract_strided_slice %48 {offsets = [0, 0], sizes = [16, 64], strides = [1, 1]} : vector<32x64xf32> to vector<16x64xf32>
    %50 = vector.extract_strided_slice %48 {offsets = [16, 0], sizes = [16, 64], strides = [1, 1]} : vector<32x64xf32> to vector<16x64xf32>
    %c1_i32_32 = arith.constant 1 : i32
    %51 = tpu.dynamic_rotate %49 by %c1_i32_32 dim 0 : vector<16x64xf32>, i32 -> vector<16x64xf32>
    %c0_33 = arith.constant 0 : index
    %c0_34 = arith.constant 0 : index
    %c0_35 = arith.constant 0 : index
    %52 = vector.load %arg11[%c0_33, %c0_34, %c0_35] : memref<5x16x1xf32, #tpu.memory_space<vmem>>, vector<1x16x1xf32>
    %53 = vector.shape_cast %52 : vector<1x16x1xf32> to vector<16x1xf32>
    %54 = vector.broadcast %53 : vector<16x1xf32> to vector<16x64xf32>
    %55 = arith.mulf %51, %54 : vector<16x64xf32>
    %c1_i32_36 = arith.constant 1 : i32
    %56 = tpu.dynamic_rotate %50 by %c1_i32_36 dim 0 : vector<16x64xf32>, i32 -> vector<16x64xf32>
    %c1_37 = arith.constant 1 : index
    %c0_38 = arith.constant 0 : index
    %c0_39 = arith.constant 0 : index
    %57 = vector.load %arg11[%c1_37, %c0_38, %c0_39] : memref<5x16x1xf32, #tpu.memory_space<vmem>>, vector<1x16x1xf32>
    %58 = vector.shape_cast %57 : vector<1x16x1xf32> to vector<16x1xf32>
    %59 = vector.broadcast %58 : vector<16x1xf32> to vector<16x64xf32>
    %60 = arith.mulf %56, %59 : vector<16x64xf32>
    %c15_i32 = arith.constant 15 : i32
    %61 = tpu.dynamic_rotate %49 by %c15_i32 dim 0 : vector<16x64xf32>, i32 -> vector<16x64xf32>
    %c4_40 = arith.constant 4 : index
    %c0_41 = arith.constant 0 : index
    %c0_42 = arith.constant 0 : index
    %62 = vector.load %arg11[%c4_40, %c0_41, %c0_42] : memref<5x16x1xf32, #tpu.memory_space<vmem>>, vector<1x16x1xf32>
    %63 = vector.shape_cast %62 : vector<1x16x1xf32> to vector<16x1xf32>
    %64 = vector.broadcast %63 : vector<16x1xf32> to vector<16x64xf32>
    %65 = arith.mulf %61, %64 : vector<16x64xf32>
    %66 = tpu.concatenate %55, %60, %49, %50, %65 in 1 : vector<16x64xf32>, vector<16x64xf32>, vector<16x64xf32>, vector<16x64xf32>, vector<16x64xf32> -> vector<16x320xf32>
    %c0_43 = arith.constant 0 : index
    %c0_44 = arith.constant 0 : index
    %67 = vector.load %arg9[%c0_43, %c0_44] : memref<320x128xf32, #tpu.memory_space<vmem>>, vector<320x128xf32>
    %cst_45 = arith.constant dense<0.000000e+00> : vector<16x128xf32>
    %68 = tpu.matmul %66, %67, %cst_45 {dimension_numbers = #tpu.dot_dimension_numbers<[1], [0], [0], [1], [0, 0, 1, 1], [], []>} : vector<16x320xf32>, vector<320x128xf32>, vector<16x128xf32> -> vector<16x128xf32>
    %c0_46 = arith.constant 0 : index
    %c0_47 = arith.constant 0 : index
    %69 = vector.load %arg10[%c0_46, %c0_47] : memref<1x128xf32, #tpu.memory_space<vmem>>, vector<1x128xf32>
    %70 = vector.broadcast %69 : vector<1x128xf32> to vector<16x128xf32>
    %71 = arith.addf %68, %70 : vector<16x128xf32>
    %c0_48 = arith.constant 0 : index
    %c0_49 = arith.constant 0 : index
    %72 = vector.load %arg13[%c0_48, %c0_49] : memref<16x128xf32, #tpu.memory_space<vmem>>, vector<16x128xf32>
    tpu.vector_store %arg13[%c0_48, %c0_49], %71 {strides = array<i32>} : memref<16x128xf32, #tpu.memory_space<vmem>>, vector<16x128xf32>,
    return
  }
  func.func @transform_0(%arg0: i32) -> (i32, i32) {
    %c0_i32 = arith.constant 0 : i32
    %c0_i32_0 = arith.constant 0 : i32
    return %arg0, %c0_i32 : i32, i32
  }
  func.func @transform_1(%arg0: i32) -> (i32, i32) {
    %c0_i32 = arith.constant 0 : i32
    %c0_i32_0 = arith.constant 0 : i32
    %c0_i32_1 = arith.constant 0 : i32
    return %c0_i32, %c0_i32_0 : i32, i32
  }
  func.func @transform_2(%arg0: i32) -> (i32, i32) {
    %c0_i32 = arith.constant 0 : i32
    %c0_i32_0 = arith.constant 0 : i32
    %c0_i32_1 = arith.constant 0 : i32
    return %c0_i32, %c0_i32_0 : i32, i32
  }
  func.func @transform_3(%arg0: i32) -> (i32, i32, i32) {
    %c0_i32 = arith.constant 0 : i32
    %c0_i32_0 = arith.constant 0 : i32
    %c0_i32_1 = arith.constant 0 : i32
    %c0_i32_2 = arith.constant 0 : i32
    return %c0_i32, %c0_i32_0, %c0_i32_1 : i32, i32, i32
  }
  func.func @transform_4(%arg0: i32) -> (i32, i32) {
    %c0_i32 = arith.constant 0 : i32
    %c0_i32_0 = arith.constant 0 : i32
    %c0_i32_1 = arith.constant 0 : i32
    return %c0_i32, %c0_i32_0 : i32, i32
  }
  func.func @transform_5(%arg0: i32) -> (i32, i32) {
    %c0_i32 = arith.constant 0 : i32
    %c0_i32_0 = arith.constant 0 : i32
    %c0_i32_1 = arith.constant 0 : i32
    return %c0_i32, %c0_i32_0 : i32, i32
  }
  func.func @transform_6(%arg0: i32) -> (i32, i32, i32) {
    %c0_i32 = arith.constant 0 : i32
    %c0_i32_0 = arith.constant 0 : i32
    %c0_i32_1 = arith.constant 0 : i32
    %c0_i32_2 = arith.constant 0 : i32
    return %c0_i32, %c0_i32_0, %c0_i32_1 : i32, i32, i32
  }
  func.func @transform_7(%arg0: i32) -> (i32, i32) {
    %c0_i32 = arith.constant 0 : i32
    %c0_i32_0 = arith.constant 0 : i32
    %c0_i32_1 = arith.constant 0 : i32
    return %c0_i32, %c0_i32_0 : i32, i32
  }
  func.func @transform_8(%arg0: i32) -> (i32, i32) {
    %c0_i32 = arith.constant 0 : i32
    %c0_i32_0 = arith.constant 0 : i32
    %c0_i32_1 = arith.constant 0 : i32
    return %c0_i32, %c0_i32_0 : i32, i32
  }
  func.func @transform_9(%arg0: i32) -> (i32, i32) {
    %c0_i32 = arith.constant 0 : i32
    %c0_i32_0 = arith.constant 0 : i32
    %c0_i32_1 = arith.constant 0 : i32
    return %c0_i32, %c0_i32_0 : i32, i32
  }
  func.func @transform_10(%arg0: i32) -> (i32, i32, i32) {
    %c0_i32 = arith.constant 0 : i32
    %c0_i32_0 = arith.constant 0 : i32
    %c0_i32_1 = arith.constant 0 : i32
    %c0_i32_2 = arith.constant 0 : i32
    return %c0_i32, %c0_i32_0, %c0_i32_1 : i32, i32, i32
  }
  func.func @transform_11(%arg0: i32) -> (i32, i32) {
    %c0_i32 = arith.constant 0 : i32
    %c0_i32_0 = arith.constant 0 : i32
    %c0_i32_1 = arith.constant 0 : i32
    return %c0_i32, %c0_i32_0 : i32, i32
  }
  func.func @transform_12(%arg0: i32) -> (i32, i32) {
    %c0_i32 = arith.constant 0 : i32
    %c0_i32_0 = arith.constant 0 : i32
    return %arg0, %c0_i32 : i32, i32
  }
}

</mosaic_0001>

<bundles_post_ra>
// kernel: tpu_custom_call.1
= control target key start
LH: loop header
LB: loop body
LE: loop exit
PB: predicated region body
PF: predicated region fallthrough
CT: control target
= control target key end

     0   :  { %s3488_s0 = inlined_call_operand.vmem [shape: f32[128,64], index: 0, kind: input, shape index: {}]   ;;  %s3489_s1 = inlined_call_operand.vmem [shape: f32[192,128], index: 1, kind: input, shape index: {}]   ;;  %s3490_s2 = inlined_call_operand.vmem [shape: f32[1,128], index: 2, kind: input, shape index: {}]   ;;  %s3491_s3 = inlined_call_operand.vmem [shape: f32[3,64,1], index: 3, kind: input, shape index: {}]   ;;  %s3492_s4 = inlined_call_operand.vmem [shape: f32[640,64], index: 4, kind: input, shape index: {}]   ;;  %s3493_s5 = inlined_call_operand.vmem [shape: f32[1,64], index: 5, kind: input, shape index: {}]   ;;  %s3494_s6 = inlined_call_operand.vmem [shape: f32[5,32,1], index: 6, kind: input, shape index: {}]   ;;  %s3495_s7 = inlined_call_operand.vmem [shape: f32[64,64], index: 7, kind: input, shape index: {}]   ;;  %s3496_s8 = inlined_call_operand.vmem [shape: f32[320,128], index: 8, kind: input, shape index: {}]   ;;  %s3497_s9 = inlined_call_operand.vmem [shape: f32[1,128], index: 9, kind: input, shape index: {}]   ;;  %s3498_s10 = inlined_call_operand.vmem [shape: f32[5,16,1], index: 10, kind: input, shape index: {}]   ;;  %s3499_s11 = inlined_call_operand.vmem [shape: f32[32,32], index: 11, kind: input, shape index: {}]   ;;  %s3500_s12 = inlined_call_operand.hbm [shape: f32[32,128], index: 12, kind: output, shape index: {}]  }
   0x1   :  { %3503 = sst [smem:[#allocation5_spill]] %s3488_s0 }
   0x2   :  { %3504 = sst [smem:[#allocation6_spill]] %s3489_s1 }
   0x3   :  { %3505 = sst [smem:[#allocation7_spill]] %s3491_s3 }
   0x4   :  { %17 = vsyncpa [#allocation3], 0 }
   0x5   :  { %19 = vsyncpa [#allocation3 + $0x1], 0  ;;  %s2583_s21 = smov 0   ;;  %s2585_s22 = smov 0  }
   0x6   :  { %s2587_s23 = smov 0   ;;  %s2589_s24 = smov 0  }
   0x7 LB: > { %s2604_s25 = sadd.s32 4294967295, %s2510_s24   ;;  %s1841_s26 = sadd.s32 4294967294, %s2510_s24   ;;  %s2510_s24 = sphi %s2589_s24, %s3515_s24   ;;  %s2506_s23 = sphi %s2587_s23, %s3514_s23   ;;  %s2502_s22 = sphi %s2585_s22, %s3513_s22   ;;  %s2498_s21 = sphi %s2583_s21, %s3512_s21  }
   0x8   : > { %s2608_s27 = sadd.s32 1, %s2510_s24   ;;  %s289_s28 = sadd.s32 1, %s2506_s23 }
   0x9   : > { %s286_s29 = ssub.s32 %s2510_s24, %s2608_s27  ;;  %p299_p0 = scmp.ne.s32.totalorder %s2506_s23, %s2502_s22 }
   0xa   : > { %p287_p1 = scmp.eq.s32.totalorder %s286_s29, 0  ;;  %p300_p2 = scmp.eq.s32.totalorder %s2604_s25, 1 }
   0xb   : > { %p305_p3 = scmp.ne.s32.totalorder %s2502_s22, %s2498_s21  ;;  %p306_p4 = scmp.eq.s32.totalorder %s1841_s26, 1 }
   0xc   : > { %s2619_s30 = scalar_select %p287_p1, %s2506_s23, %s289_s28  }
   0xd   : > { %p2621_p5 = por %p300_p2, %p299_p0  ;;  %p2625_p6 = por %p306_p4, %p305_p3 }
   0xe   : > { %p1844_p7 = scmp.ge.s32.totalorder %s2510_s24, 1  ;;  %p366_p8 = scmp.lt.s32.totalorder %s2510_s24, 3 }
  0x10   : > { %p367_p9 = pnand %p1844_p7, %p366_p8 }
  0x11   : > { %s3508_s3 = sld [smem:[#allocation7_spill]] (!%p367_p9)  ;;  %s1846_s19 = sshll.u32 (!%p367_p9), %s2604_s25, 3  ;;  %v2512_v2 = vmov (!%p367_p9), 0   ;;  %v439_v3 = vlaneseq (!%p367_p9)  ;;  %v2513_v6 = vmov (!%p367_p9), 0.0|0.0   ;;  %vm612_vm2 = vcmask (!%p367_p9), 523264  }
  0x12   : > { %370 = sbr.rel (%p367_p9) target bundleno = 1489 (0x5d1), region = 68  ;;  %2427 = vset.pattern.permute.xlu1 (!%p367_p9), %v2512_v2  ;;  %2426 = vset.pattern.permute.xlu0 (!%p367_p9), %v2512_v2  ;;  %p409_p10 = scmp.lt.s32.totalorder (!%p367_p9), %s1846_s19, 15  ;;  %vm1386_vm3 = vcmask (!%p367_p9), 261120  }
  0x13   : > { %2178 = vmatprep.subr.bf16.mxu0 (!%p367_p9), %v2513_v6  ;;  %v2645_v7 = vshrl.u32 (!%p367_p9), %v439_v3, 7  ;;  %s3509_s0 = sld [smem:[#allocation5_spill]] (!%p367_p9)  ;;  %s3501_s16 = smov (!%p367_p9), 64  }
  0x14   : > { %s3510_s1 = sld [smem:[#allocation6_spill]] (!%p367_p9)  ;;  %s3511_s18 = smov (!%p367_p9), 64  }
  0x15   : > { %vm441_vm0 = vcmp.lt.s32.totalorder (!%p367_p9), %v2645_v7, 1  ;;  %vm514_vm1 = vcmp.lt.s32.totalorder (!%p367_p9), %v2645_v7, 7  ;;  %s1898_s26 = sshll.u32 (!%p367_p9), %s2604_s25, 8  ;;  %s2515_s25 = smov (!%p367_p9), [#allocation2]  }
  0x17   : > { %v451_v0 = vld [vmem:[%s3508_s3 + $0x8] sm:$0xff] (!%p367_p9)  ;;  %v450_v1 = vld [vmem:[%s3508_s3] sm:$0xff] (!%p367_p9)  ;;  %v1850_v8 = vld [vmem:[%s3508_s3 + $0x90] sm:$0xff] (!%p367_p9) }
  0x18   : > { %465 = vperm.xlu1 (!%p367_p9), %2427, %v451_v0   ;;  %460 = vperm.xlu0 (!%p367_p9), %2426, %v450_v1   ;;  %v1849_v4 = vld [vmem:[%s3508_s3 + $0x88] sm:$0xff] (!%p367_p9)  ;;  %v1848_v5 = vld [vmem:[%s3508_s3 + $0x80] sm:$0xff] (!%p367_p9)  ;;  %v452_v9 = vld [vmem:[%s3508_s3 + $0x10] sm:$0xff] (!%p367_p9) }
  0x19   : > { %s3517_s19 = smov (!%p409_p10, %s1846_s19), 15  ;;  %v453_v24 = vld [vmem:[%s3508_s3 + $0x18] sm:$0xff]  ;;  %v454_v38 = vld [vmem:[%s3508_s3 + $0x20] sm:$0xff]  ;;  %v1853_v63 = vld [vmem:[%s3508_s3 + $0xa8] sm:$0xff] }
  0x1a   : > { %s1847_s15 = sshll.u32 %s3517_s19, 3  ;;  %v1851_v39 = vld [vmem:[%s3508_s3 + $0x98] sm:$0xff]  ;;  %v621_v44 = vld [vmem:[%s3510_s1] sm:$0xff]  ;;  %v622_v45 = vld [vmem:[%s3510_s1 + $0x8] sm:$0xff] }
  0x1b   : > { %s2656_s29 = scalar_lea.vmem %s3509_s0, %s1847_s15  ;;  %v2179_v49 = vpack.c.bf16 %v622_v45, %v621_v44  ;;  %v623_v50 = vld [vmem:[%s3510_s1 + $0x10] sm:$0xff]  ;;  %v624_v51 = vld [vmem:[%s3510_s1 + $0x18] sm:$0xff]  ;;  %v1852_v55 = vld [vmem:[%s3508_s3 + $0xa0] sm:$0xff] }
  0x1c   : > { %539 = vperm.xlu1 %2427, %v1849_v4   ;;  %534 = vperm.xlu0 %2426, %v1848_v5   ;;  %v415_v10 = vld [vmem:[%s2656_s29] sm:$0xff]  ;;  %v416_v11 = vld [vmem:[%s2656_s29 + $0x8] sm:$0xff]  ;;  %v417_v12 = vld [vmem:[%s2656_s29 + $0x10] sm:$0xff]  ;;  %v2182_v56 = vpack.c.bf16 %v624_v51, %v623_v50 }
  0x1d   : > { %v2661_v13 = vand.u32 2147483647, %v415_v10  ;;  %v424_v14 = vand.u32 2147483647, %v416_v11  ;;  %v418_v15 = vld [vmem:[%s2656_s29 + $0x18] sm:$0xff]  ;;  %v419_v19 = vld [vmem:[%s2656_s29 + $0x20] sm:$0xff]  ;;  %2180 = vmatpush1.bf16.msra.mxu0 %v2179_v49 }
  0x1e   : > { %v425_v16 = vand.u32 2147483647, %v417_v12  ;;  %v426_v17 = vand.u32 2147483647, %v418_v15  ;;  %v422_v20 = vld [vmem:[%s2656_s29 + $0x38] sm:$0xff]  ;;  %v420_v34 = vld [vmem:[%s2656_s29 + $0x28] sm:$0xff]  ;;  %2181 = vmatprep.subr.bf16.mxu0 %v2513_v6 }
  0x1f   : > { %v2428_v18 = vpack.i.bf16 %v424_v14, %v2661_v13  ;;  %v431_v21 = vrot.slane %v2661_v13, 7  ;;  %v432_v22 = vrot.slane %v424_v14, 7  ;;  %v507_v23 = vrot.slane %v424_v14, 1  ;;  %v421_v48 = vld [vmem:[%s2656_s29 + $0x30] sm:$0xff]  ;;  %v625_v59 = vld [vmem:[%s3510_s1 + $0x20] sm:$0xff]  ;;  %v626_v60 = vld [vmem:[%s3510_s1 + $0x28] sm:$0xff] }
  0x20   : > { %544 = vperm.xlu1 %2427, %v1850_v8   ;;  %470 = vperm.xlu0 %2426, %v452_v9   ;;  %v2672_v25 = vand.u32 2147483647, %v422_v20  ;;  %v508_v27 = vrot.slane %v425_v16, 1  ;;  %v506_v28 = vrot.slane %v2661_v13, 1  ;;  %v509_v29 = vrot.slane %v426_v17, 1  ;;  %v455_v0 = vld [vmem:[%s3508_s3 + $0x28] sm:$0xff] }
  0x21   : > { %v2677_v26 = vsel %vm441_vm0, %v431_v21, %v432_v22  ;;  %v2680_v30 = vand.u32 2147483647, %v419_v19  ;;  %v433_v32 = vrot.slane %v425_v16, 7  ;;  %v434_v33 = vrot.slane %v426_v17, 7  ;;  %2183 = vmatpush1.bf16.msra.mxu0 %v2182_v56  ;;  %v627_v3 = vld [vmem:[%s3510_s1 + $0x30] sm:$0xff]  ;;  %v628_v4 = vld [vmem:[%s3510_s1 + $0x38] sm:$0xff] }
  0x22   : > { %v438_v31 = vrot.slane %v2672_v25, 7  ;;  %v2687_v35 = vsel %vm514_vm1, %v507_v23, %v508_v27  ;;  %v2693_v36 = vsel %vm514_vm1, %v506_v28, %v507_v23  ;;  %v2697_v37 = vsel %vm514_vm1, %v508_v27, %v509_v29  ;;  %2184 = vmatprep.subr.bf16.mxu0 %v2513_v6  ;;  %v1854_v10 = vld [vmem:[%s3508_s3 + $0xb0] sm:$0xff]  ;;  %v629_v15 = vld [vmem:[%s3510_s1 + $0x40] sm:$0xff]  ;;  %v457_v20 = vld [vmem:[%s3508_s3 + $0x38] sm:$0xff] }
  0x23   : > { %v2713_v41 = vsel %vm441_vm0, %v432_v22, %v433_v32  ;;  %v2717_v42 = vsel %vm441_vm0, %v433_v32, %v434_v33  ;;  %v435_v43 = vrot.slane %v2680_v30, 7  ;;  %v510_v46 = vrot.slane %v2680_v30, 1  ;;  %v456_v11 = vld [vmem:[%s3508_s3 + $0x30] sm:$0xff]  ;;  %v632_v23 = vld [vmem:[%s3510_s1 + $0x58] sm:$0xff]  ;;  %v1874_v44 = vld [vmem:[%s3494_s6 + $0x28] sm:$0xff] }
  0x24   : > { %475 = vperm.xlu1 %2427, %v453_v24   ;;  %2429 = vrot.lane.b32.xlu0 %v2428_v18, %s3501_s16  ;;  %v2709_v40 = vsel %vm441_vm0, %v438_v31, %v431_v21  ;;  %v2727_v47 = vand.u32 2147483647, %v420_v34  ;;  %v2433_v53 = vpack.i.bf16 %v426_v17, %v425_v16  ;;  %v429_v58 = vand.u32 2147483647, %v421_v48  ;;  %v630_v16 = vld [vmem:[%s3510_s1 + $0x48] sm:$0xff]  ;;  %v631_v22 = vld [vmem:[%s3510_s1 + $0x50] sm:$0xff] }
  0x25   : > { %v2738_v52 = vsel %vm441_vm0, %v434_v33, %v435_v43  ;;  %v2742_v54 = vsel %vm514_vm1, %v509_v29, %v510_v46  ;;  %v2185_v1 = vpack.c.bf16 %v626_v60, %v625_v59  ;;  %v513_v9 = vrot.slane %v2672_v25, 1  ;;  %v1855_v24 = vld [vmem:[%s3508_s3 + $0xb8] sm:$0xff]  ;;  %v633_v29 = vld [vmem:[%s3510_s1 + $0x60] sm:$0xff]  ;;  %v635_v33 = vld [vmem:[%s3510_s1 + $0x70] sm:$0xff]  ;;  %s2452_s16 = sshll.u32 %s2515_s25, 4  ;;  %s2453_s16 = int_to_ptr.vmem [resolvable:$false] %s2452_s16 }
  0x26   : > { %v511_v57 = vrot.slane %v2727_v47, 1  ;;  %v512_v62 = vrot.slane %v429_v58, 1  ;;  %v436_v2 = vrot.slane %v2727_v47, 7  ;;  %v2188_v12 = vpack.c.bf16 %v628_v4, %v627_v3  ;;  %v636_v13 = vld [vmem:[%s3510_s1 + $0x78] sm:$0xff]  ;;  %v1873_v34 = vld [vmem:[%s3494_s6 + $0x20] sm:$0xff]  ;;  %v936_v48 = vld [vmem:[%s3494_s6 + $0x10] sm:$0xff] }
  0x27   : > { %2186 = vmatpush1.bf16.msra.mxu0 %v2185_v1  ;;  %v437_v14 = vrot.slane %v429_v58, 7  ;;  %v2191_v21 = vpack.c.bf16 %v630_v16, %v629_v15  ;;  %v2194_v27 = vpack.c.bf16 %v632_v23, %v631_v22  ;;  %v1875_v49 = vld [vmem:[%s3494_s6 + $0x30] sm:$0xff]  ;;  %v641_v51 = vld [vmem:[%s3510_s1 + $0xa0] sm:$0xff]  ;;  %v1876_v56 = vld [vmem:[%s3494_s6 + $0x38] sm:$0xff]  ;;  %s2454_s19 = scalar_lea.vmem %s2453_s16, 512 }
  0x28   : > { %480 = vperm.xlu1 %2427, %v454_v38   ;;  %549 = vperm.xlu0 %2426, %v1851_v39   ;;  %v2757_v61 = vsel %vm514_vm1, %v510_v46, %v511_v57  ;;  %v2776_v5 = vsel %vm514_vm1, %v511_v57, %v512_v62  ;;  %v2780_v8 = vsel %vm441_vm0, %v435_v43, %v436_v2  ;;  %v637_v39 = vld [vmem:[%s3510_s1 + $0x80] sm:$0xff]  ;;  %v935_v43 = vld [vmem:[%s3494_s6 + $0x8] sm:$0xff]  ;;  %v639_v46 = vld [vmem:[%s3510_s1 + $0x90] sm:$0xff] }
  0x29   : > { %2187 = vmatprep.subr.bf16.mxu0 %v2513_v6  ;;  %v2798_v17 = vsel %vm514_vm1, %v512_v62, %v513_v9  ;;  %v2802_v18 = vsel %vm441_vm0, %v436_v2, %v437_v14  ;;  %v2808_v19 = vsel %vm441_vm0, %v437_v14, %v438_v31  ;;  %v634_v31 = vld [vmem:[%s3510_s1 + $0x68] sm:$0xff]  ;;  %v2200_v38 = vpack.c.bf16 %v636_v13, %v635_v33  ;;  %v644_v59 = vld [vmem:[%s3510_s1 + $0xb8] sm:$0xff]  ;;  %v1877_v62 = vld [vmem:[%s3494_s6 + $0x80] sm:$0xff] }
  0x2a   : > { %v2197_v32 = vpack.c.bf16 %v634_v31, %v633_v29  ;;  %v1878_v60 = vld [vmem:[%s3494_s6 + $0x88] sm:$0xff]  ;;  %v1879_v1 = vld [vmem:[%s3494_s6 + $0x90] sm:$0xff]  ;;  %v1887_v2 = vld [vmem:[%s3498_s10 + $0x18] sm:$0xff] }
  0x2b   : > { %2189 = vmatpush1.bf16.msra.mxu0 %v2188_v12  ;;  %v1489_v3 = vld [vmem:[%s3498_s10 + $0x8] sm:$0xff]  ;;  %v1488_v4 = vld [vmem:[%s3498_s10] sm:$0xff] }
  0x2c   : > { %2434 = vrot.lane.b32.xlu1 %v2433_v53, %s3511_s18  ;;  %554 = vperm.xlu0 %2426, %v1852_v55   ;;  %v642_v53 = vld [vmem:[%s3510_s1 + $0xa8] sm:$0xff]  ;;  %v937_v55 = vld [vmem:[%s3494_s6 + $0x18] sm:$0xff] }
  0x2d   : > { %2190 = vmatprep.subr.bf16.mxu0 %v2513_v6  ;;  %v2209_v57 = vpack.c.bf16 %v642_v53, %v641_v51 }
  0x2f   : > { %2192 = vmatpush1.bf16.msra.mxu0 %v2191_v21 }
  0x30   : > { %559 = vperm.xlu1 %2427, %v1853_v63   ;;  %485 = vperm.xlu0 %2426, %v455_v0   ;;  %v1880_v0 = vld [vmem:[%s3494_s6 + $0x98] sm:$0xff] }
  0x31   : > { %2193 = vmatprep.subr.bf16.mxu0 %v2513_v6 }
  0x33   : > { %2195 = vmatpush1.bf16.msra.mxu0 %v2194_v27 }
  0x34   : > { %564 = vperm.xlu1 %2427, %v1854_v10   ;;  %490 = vperm.xlu0 %2426, %v456_v11   ;;  %v1889_v10 = vld [vmem:[%s3498_s10 + $0x48] sm:$0xff] }
  0x35   : > { %2196 = vmatprep.subr.bf16.mxu0 %v2513_v6 }
  0x37   : > { %2198 = vmatpush1.bf16.msra.mxu0 %v2197_v32 }
  0x38   : > { %495 = vperm.xlu1 %2427, %v457_v20   ;;  %596 = vrot.lane.b32.xlu0 %v2680_v30, %s3511_s18  ;;  %v2836_v30 = vsel %vm514_vm1, %v513_v9, %v506_v28  ;;  %v934_v28 = vld [vmem:[%s3494_s6] sm:$0xff] }
  0x39   : > { %2199 = vmatprep.subr.bf16.mxu0 %v2513_v6  ;;  %v1888_v9 = vld [vmem:[%s3498_s10 + $0x40] sm:$0xff] }
  0x3b   : > { %2201 = vmatpush1.bf16.msra.mxu0 %v2200_v38 }
  0x3c   : > { %598 = vrot.lane.b32.xlu1 %v2727_v47, %s3511_s18  ;;  %569 = vperm.xlu0 %2426, %v1855_v24   ;;  %v640_v47 = vld [vmem:[%s3510_s1 + $0x98] sm:$0xff] }
  0x3d   : > { %2202 = vmatprep.subr.bf16.mxu0 %v2513_v6  ;;  %v2206_v50 = vpack.c.bf16 %v640_v47, %v639_v46 }
  0x40   : > { %602 = vrot.lane.b32.xlu1 %v2672_v25, %s3511_s18  ;;  %600 = vrot.lane.b32.xlu0 %v429_v58, %s3511_s18  ;;  %v638_v25 = vld [vmem:[%s3510_s1 + $0x88] sm:$0xff]  ;;  %v643_v58 = vld [vmem:[%s3510_s1 + $0xb0] sm:$0xff]  ;;  %s3445_s1 = scalar_lea.hbm %s3500_s12, %s1898_s26 }
  0x41   : > { %v2203_v45 = vpack.c.bf16 %v638_v25, %v637_v39  ;;  %v2212_v63 = vpack.c.bf16 %v644_v59, %v643_v58 }
  0x43   : > { %2204 = vmatpush1.bf16.msra.mxu0 %v2203_v45 }
  0x44   : > { %940 = vperm.xlu1 %2427, %v934_v28   ;;  %977 = vperm.xlu0 %2426, %v1873_v34  }
  0x45   : > { %2205 = vmatprep.subr.bf16.mxu0 %v2513_v6 }
  0x47   : > { %2207 = vmatpush1.bf16.msra.mxu0 %v2206_v50 }
  0x48   : > { %945 = vperm.xlu1 %2427, %v935_v43   ;;  %982 = vperm.xlu0 %2426, %v1874_v44  }
  0x49   : > { %2208 = vmatprep.subr.bf16.mxu0 %v2513_v6 }
  0x4b   : > { %2210 = vmatpush1.bf16.msra.mxu0 %v2209_v57 }
  0x4c   : > { %950 = vperm.xlu1 %2427, %v936_v48   ;;  %987 = vperm.xlu0 %2426, %v1875_v49  }
  0x4d   : > { %2211 = vmatprep.subr.bf16.mxu0 %v2513_v6  ;;  %v1886_v6 = vld [vmem:[%s3498_s10 + $0x10] sm:$0xff] }
  0x4f   : > { %2213 = vmatpush1.bf16.msra.mxu0 %v2212_v63 }
  0x50   : > { %955 = vperm.xlu1 %2427, %v937_v55   ;;  %992 = vperm.xlu0 %2426, %v1876_v56  }
  0x54   : > { %1019 = vperm.xlu1 %2427, %v1878_v60   ;;  %1014 = vperm.xlu0 %2426, %v1877_v62   ;;  %v1085_v62 = vld [vmem:[%s3492_s4 + $0x188] sm:$0xff] }
  0x58   : > { %1029 = vperm.xlu1 %2427, %v1880_v0   ;;  %1024 = vperm.xlu0 %2426, %v1879_v1   ;;  %v1069_v0 = vld [vmem:[%s3492_s4 + $0x108] sm:$0xff]  ;;  %v1086_v1 = vld [vmem:[%s3492_s4 + $0x190] sm:$0xff] }
  0x5c   : > { %1516 = vperm.xlu1 %2427, %v1887_v2   ;;  %1511 = vperm.xlu0 %2426, %v1886_v6   ;;  %v1087_v2 = vld [vmem:[%s3492_s4 + $0x198] sm:$0xff] }
  0x60   : > { %1497 = vperm.xlu1 %2427, %v1489_v3   ;;  %1492 = vperm.xlu0 %2426, %v1488_v4   ;;  %v2266_v3 = vpack.c.bf16 %v1087_v2, %v1086_v1  ;;  %v1070_v4 = vld [vmem:[%s3492_s4 + $0x110] sm:$0xff]  ;;  %v1053_v1 = vld [vmem:[%s3492_s4 + $0x88] sm:$0xff] }
  0x64   : > { %1530 = vperm.xlu0 %2426, %v1888_v9   ;;  %v1071_v9 = vld [vmem:[%s3492_s4 + $0x118] sm:$0xff] }
  0x68   : > { %1535 = vperm.xlu0 %2426, %v1889_v10   ;;  %v2268_v10 = vpack.c.bf16 %v1071_v9, %v1070_v4  ;;  %v1036_v9 = vld [vmem:[%s3492_s4] sm:$0xff] }
  0x97   : > { %v466_v11 = vpop.permute.xlu1 %465  ;;  %v461_v12 = vpop.permute.xlu0 %460 }
  0x98   : > { %v498_v24 = vmul.f32 %v461_v12, %v2709_v40  ;;  %v499_v28 = vmul.f32 %v466_v11, %v2677_v26  ;;  %v1088_v11 = vld [vmem:[%s3492_s4 + $0x1a0] sm:$0xff]  ;;  %v1089_v12 = vld [vmem:[%s3492_s4 + $0x1a8] sm:$0xff] }
  0x9b   : > { %v540_v14 = vpop.permute.xlu1 %539  ;;  %v535_v15 = vpop.permute.xlu0 %534 }
  0x9c   : > { %v572_v16 = vmul.f32 %v535_v15, %v2693_v36  ;;  %v573_v29 = vmul.f32 %v540_v14, %v2687_v35  ;;  %v2270_v14 = vpack.c.bf16 %v1089_v12, %v1088_v11  ;;  %v1072_v15 = vld [vmem:[%s3492_s4 + $0x120] sm:$0xff]  ;;  %v1054_v11 = vld [vmem:[%s3492_s4 + $0x90] sm:$0xff]  ;;  %v1055_v12 = vld [vmem:[%s3492_s4 + $0x98] sm:$0xff] }
  0x9e   : > { %1857 = vmatprep.mubr.msk.f32.mxu0 %vm612_vm2, %v572_v16  ;;  %v1073_v16 = vld [vmem:[%s3492_s4 + $0x128] sm:$0xff] }
  0x9f   : > { %v545_v20 = vpop.permute.xlu1 %544  ;;  %v471_v21 = vpop.permute.xlu0 %470 }
  0xa0   : > { %v574_v36 = vmul.f32 %v545_v20, %v2697_v37  ;;  %v500_v40 = vmul.f32 %v471_v21, %v2713_v41  ;;  %v1090_v20 = vld [vmem:[%s3492_s4 + $0x1b0] sm:$0xff]  ;;  %v1091_v21 = vld [vmem:[%s3492_s4 + $0x1b8] sm:$0xff] }
  0xa3   : > { %v476_v22 = vpop.permute.xlu1 %475  ;;  %v2430_v23 = vpop.permute.xlu0 %2429 }
  0xa4   : > { %v2431_v27 = vunpack.i.l.bf16 %v2430_v23  ;;  %v2432_v31 = vunpack.i.h.bf16 %v2430_v23  ;;  %v501_v37 = vmul.f32 %v476_v22, %v2717_v42  ;;  %v2272_v22 = vpack.c.bf16 %v1073_v16, %v1072_v15  ;;  %v791_v16 = vld [vmem:[%s3495_s7 + $0x10] sm:$0xff] }
  0xa5   : > { %v2274_v23 = vpack.c.bf16 %v1091_v21, %v1090_v20  ;;  %v2234_v20 = vpack.c.bf16 %v1055_v12, %v1054_v11  ;;  %v1038_v21 = vld [vmem:[%s3492_s4 + $0x10] sm:$0xff]  ;;  %v1051_v11 = vld [vmem:[%s3492_s4 + $0x78] sm:$0xff] }
  0xa6   : > { %v613_v32 = vsel %vm612_vm2, %v498_v24, %v2431_v27  ;;  %v614_v34 = vsel %vm612_vm2, %v499_v28, %v2432_v31  ;;  %v1074_v24 = vld [vmem:[%s3492_s4 + $0x130] sm:$0xff]  ;;  %v1075_v27 = vld [vmem:[%s3492_s4 + $0x138] sm:$0xff]  ;;  %v1093_v31 = vld [vmem:[%s3492_s4 + $0x1c8] sm:$0xff] }
  0xa7   : > { %v481_v33 = vpop.permute.xlu1 %480  ;;  %v550_v13 = vpop.permute.xlu0 %549  ;;  %741 = vmatmul.mubr.f32.vlgmr.msra.gmra.mrb[0].mxu0 %v613_v32  ;;  %v2276_v32 = vpack.c.bf16 %v1075_v27, %v1074_v24  ;;  %v1077_v28 = vld [vmem:[%s3492_s4 + $0x148] sm:$0xff]  ;;  %v792_v27 = vld [vmem:[%s3495_s7 + $0x18] sm:$0xff] }
  0xa8   : > { %1858 = vmatprep.mubr.msk.f32.mxu0 %vm612_vm2, %v573_v29  ;;  %v575_v25 = vmul.f32 %v550_v13, %v2742_v54  ;;  %v502_v54 = vmul.f32 %v481_v33, %v2738_v52  ;;  %v1092_v29 = vld [vmem:[%s3492_s4 + $0x1c0] sm:$0xff]  ;;  %v1057_v24 = vld [vmem:[%s3492_s4 + $0xa8] sm:$0xff] }
  0xa9   : > { %v2278_v33 = vpack.c.bf16 %v1093_v31, %v1092_v29  ;;  %v1076_v13 = vld [vmem:[%s3492_s4 + $0x140] sm:$0xff] }
  0xaa   : > { %v793_v31 = vld [vmem:[%s3495_s7 + $0x20] sm:$0xff] }
  0xab   : > { %v2435_v38 = vpop.permute.xlu1 %2434  ;;  %v555_v39 = vpop.permute.xlu0 %554  ;;  %746 = vmatmul.mubr.f32.gmra.mrb[2].mxu0 %v614_v34  ;;  %v1095_v34 = vld [vmem:[%s3492_s4 + $0x1d8] sm:$0xff] }
  0xac   : > { %v2436_v35 = vunpack.i.l.bf16 %v2435_v38  ;;  %1859 = vmatprep.mubr.msk.f32.mxu0 %vm612_vm2, %v574_v36  ;;  %v2437_v43 = vunpack.i.h.bf16 %v2435_v38  ;;  %v576_v46 = vmul.f32 %v555_v39, %v2757_v61  ;;  %v1094_v36 = vld [vmem:[%s3492_s4 + $0x1d0] sm:$0xff]  ;;  %v2280_v38 = vpack.c.bf16 %v1077_v28, %v1076_v13  ;;  %v1041_v13 = vld [vmem:[%s3492_s4 + $0x28] sm:$0xff] }
  0xad   : > { %v2282_v39 = vpack.c.bf16 %v1095_v34, %v1094_v36  ;;  %v1058_v28 = vld [vmem:[%s3492_s4 + $0xb0] sm:$0xff]  ;;  %v1059_v36 = vld [vmem:[%s3492_s4 + $0xb8] sm:$0xff]  ;;  %v794_v34 = vld [vmem:[%s3495_s7 + $0x28] sm:$0xff] }
  0xae   : > { %v615_v44 = vsel %vm612_vm2, %v500_v40, %v2436_v35  ;;  %v616_v47 = vsel %vm612_vm2, %v501_v37, %v2437_v43  ;;  %v1856_v40 = vld [vmem:[%s3490_s2] ss:$0 sm:$0xff] }
  0xaf   : > { %v560_v26 = vpop.permute.xlu1 %559  ;;  %v486_v45 = vpop.permute.xlu0 %485  ;;  %751 = vmatmul.mubr.f32.gmra.mrb[4].mxu0 %v615_v44 }
  0xb0   : > { %1860 = vmatprep.mubr.msk.f32.mxu0 %vm612_vm2, %v575_v25  ;;  %v577_v51 = vmul.f32 %v560_v26, %v2776_v5  ;;  %v503_v42 = vmul.f32 %v486_v45, %v2780_v8 }
  0xb3   : > { %v565_v41 = vpop.permute.xlu1 %564  ;;  %v491_v48 = vpop.permute.xlu0 %490  ;;  %756 = vmatmul.mubr.f32.gmra.mrb[6].mxu0 %v616_v47 }
  0xb4   : > { %1861 = vmatprep.mubr.msk.f32.mxu0 %vm612_vm2, %v576_v46  ;;  %v578_v56 = vmul.f32 %v565_v41, %v2798_v17  ;;  %v504_v52 = vmul.f32 %v491_v48, %v2802_v18  ;;  %v789_v18 = vld [vmem:[%s3495_s7] sm:$0xff] }
  0xb5   : > { %2095 = vmatprep.mubr.msk.f32.mxu1 %vm612_vm2, %v789_v18 }
  0xb7   : > { %v496_v49 = vpop.permute.xlu1 %495  ;;  %v597_v50 = vpop.permute.xlu0 %596 }
  0xb8   : > { %v617_v53 = vsel %vm612_vm2, %v502_v54, %v597_v50  ;;  %v505_v8 = vmul.f32 %v496_v49, %v2808_v19  ;;  %v1068_v19 = vld [vmem:[%s3492_s4 + $0x100] sm:$0xff] }
  0xb9   : > { %761 = vmatmul.mubr.f32.gmra.mrb[8].mxu0 %v617_v53  ;;  %v2264_v6 = vpack.c.bf16 %v1069_v0, %v1068_v19  ;;  %v1052_v0 = vld [vmem:[%s3492_s4 + $0x80] sm:$0xff] }
  0xba   : > { %1862 = vmatprep.mubr.msk.f32.mxu0 %vm612_vm2, %v577_v51  ;;  %v2230_v4 = vpack.c.bf16 %v1053_v1, %v1052_v0  ;;  %v1048_v1 = vld [vmem:[%s3492_s4 + $0x60] sm:$0xff] }
  0xbb   : > { %v599_v61 = vpop.permute.xlu1 %598  ;;  %v570_v55 = vpop.permute.xlu0 %569 }
  0xbc   : > { %v618_v57 = vsel %vm612_vm2, %v503_v42, %v599_v61  ;;  %v579_v5 = vmul.f32 %v570_v55, %v2836_v30  ;;  %v1084_v30 = vld [vmem:[%s3492_s4 + $0x180] sm:$0xff] }
  0xbd   : > { %766 = vmatmul.mubr.f32.gmra.mrb[10].mxu0 %v618_v57  ;;  %v2262_v63 = vpack.c.bf16 %v1085_v62, %v1084_v30 }
  0xbe   : > { %1863 = vmatprep.mubr.msk.f32.mxu0 %vm612_vm2, %v578_v56 }
  0xbf   : > { %v601_v58 = vpop.permute.xlu0 %600  ;;  %v603_v60 = vpop.permute.xlu1 %602  ;;  %2263 = vmatprep.subr.bf16.mxu0 %v2262_v63 }
  0xc0   : > { %v619_v59 = vsel %vm612_vm2, %v504_v52, %v601_v58  ;;  %v620_v17 = vsel %vm612_vm2, %v505_v8, %v603_v60  ;;  %2265 = vmatpush3.bf16.msra.mxu0 %v2264_v6 }
  0xc1   : > { %771 = vmatmul.mubr.f32.gmra.mrb[12].mxu0 %v619_v59  ;;  %2267 = vmatprep.subr.bf16.mxu0 %v2266_v3 }
  0xc2   : > { %1864 = vmatprep.mubr.msk.f32.mxu0 %vm612_vm2, %v579_v5 }
  0xc4   : > { %2269 = vmatpush3.bf16.msra.mxu0 %v2268_v10  ;;  %v1037_v10 = vld [vmem:[%s3492_s4 + $0x8] sm:$0xff] }
  0xc5   : > { %776 = vmatmul.mubr.f32.gmra.mrb[14].mxu0 %v620_v17  ;;  %2271 = vmatprep.subr.bf16.mxu0 %v2270_v14  ;;  %v790_v14 = vld [vmem:[%s3495_s7 + $0x8] sm:$0xff]  ;;  %v2232_v15 = vpack.c.bf16 %v1037_v10, %v1036_v9  ;;  %v1050_v10 = vld [vmem:[%s3492_s4 + $0x70] sm:$0xff] }
  0xc6   : > { %v2260_v12 = vpack.c.bf16 %v1051_v11, %v1050_v10 }
  0xc8   : > { %2273 = vmatpush3.bf16.msra.mxu0 %v2272_v22  ;;  %v1039_v22 = vld [vmem:[%s3492_s4 + $0x18] sm:$0xff] }
  0xc9   : > { %2275 = vmatprep.subr.bf16.mxu0 %v2274_v23  ;;  %v1056_v23 = vld [vmem:[%s3492_s4 + $0xa0] sm:$0xff]  ;;  %v2236_v29 = vpack.c.bf16 %v1039_v22, %v1038_v21 }
  0xcc   : > { %2277 = vmatpush3.bf16.msra.mxu0 %v2276_v32  ;;  %v2238_v32 = vpack.c.bf16 %v1057_v24, %v1056_v23 }
  0xcd   : > { %2279 = vmatprep.subr.bf16.mxu0 %v2278_v33  ;;  %v1040_v33 = vld [vmem:[%s3492_s4 + $0x20] sm:$0xff] }
  0xd0   : > { %2281 = vmatpush3.bf16.msra.mxu0 %v2280_v38  ;;  %v2240_v38 = vpack.c.bf16 %v1041_v13, %v1040_v33  ;;  %v978_v33 = vpop.permute.xlu0 %977 }
  0xd1   : > { %2283 = vmatprep.subr.bf16.mxu0 %v2282_v39  ;;  %v795_v39 = vld [vmem:[%s3495_s7 + $0x30] sm:$0xff] }
 0x17a   : > { %v742_v35 = vpop.f32.mrb[0].mxu0 }
 0x17b   : > { %v744_v25 = vpop.f32.mrb[1].mxu0  ;;  %v743_v43 = vadd.f32 %v1856_v40, %v742_v35  ;;  %v1042_v35 = vld [vmem:[%s3492_s4 + $0x30] sm:$0xff] }
 0x17c   : > { %v1043_v25 = vld [vmem:[%s3492_s4 + $0x38] sm:$0xff] }
 0x17d   : > { %v781_v37 = vmax.f32 %v743_v43, 0.0  ;;  %v796_v43 = vld [vmem:[%s3495_s7 + $0x38] sm:$0xff] }
 0x17e   : > { %v747_v44 = vpop.f32.mrb[2].mxu0 }
 0x17f   : > { %v748_v26 = vadd.f32 %v1856_v40, %v747_v44  ;;  %v749_v45 = vpop.f32.mrb[3].mxu0  ;;  %v2244_v44 = vpack.c.bf16 %v1043_v25, %v1042_v35 }
 0x180   : > { %v1079_v45 = vld [vmem:[%s3492_s4 + $0x158] sm:$0xff] }
 0x181   : > { %v782_v46 = vmax.f32 %v748_v26, 0.0  ;;  %v1078_v26 = vld [vmem:[%s3492_s4 + $0x150] sm:$0xff] }
 0x182   : > { %v752_v47 = vpop.f32.mrb[4].mxu0 }
 0x183   : > { %v754_v41 = vpop.f32.mrb[5].mxu0  ;;  %v2214_v48 = vpack.c.bf16 %v782_v46, %v781_v37  ;;  %v753_v54 = vadd.f32 %v1856_v40, %v752_v47  ;;  %v2284_v37 = vpack.c.bf16 %v1079_v45, %v1078_v26  ;;  %v1060_v46 = vld [vmem:[%s3492_s4 + $0xc0] sm:$0xff]  ;;  %v1061_v47 = vld [vmem:[%s3492_s4 + $0xc8] sm:$0xff] }
 0x184   : > { %v2246_v41 = vpack.c.bf16 %v1061_v47, %v1060_v46 }
 0x185   : > { %2215 = vmatprep.subr.bf16.mxu1 %v2214_v48  ;;  %v783_v53 = vmax.f32 %v753_v54, 0.0  ;;  %2285 = vmatpush3.bf16.msra.mxu0 %v2284_v37  ;;  %v1045_v54 = vld [vmem:[%s3492_s4 + $0x48] sm:$0xff]  ;;  %v941_v37 = vpop.permute.xlu1 %940 }
 0x186   : > { %v757_v49 = vpop.f32.mrb[6].mxu0  ;;  %2217 = vmatpush3.bf16.msra.mxu1 %v2214_v48  ;;  %v1044_v48 = vld [vmem:[%s3492_s4 + $0x40] sm:$0xff] }
 0x187   : > { %v758_v50 = vadd.f32 %v1856_v40, %v757_v49  ;;  %v759_v51 = vpop.f32.mrb[7].mxu0  ;;  %v1096_v49 = vld [vmem:[%s3492_s4 + $0x1e0] sm:$0xff] }
 0x188   : > { %v1097_v51 = vld [vmem:[%s3492_s4 + $0x1e8] sm:$0xff] }
 0x189   : > { %v784_v42 = vmax.f32 %v758_v50, 0.0  ;;  %v2248_v50 = vpack.c.bf16 %v1045_v54, %v1044_v48 }
 0x18b   : > { %v2218_v61 = vpack.c.bf16 %v784_v42, %v783_v53  ;;  %v1080_v53 = vld [vmem:[%s3492_s4 + $0x160] sm:$0xff]  ;;  %v1081_v42 = vld [vmem:[%s3492_s4 + $0x168] sm:$0xff] }
 0x18c   : > { %v762_v55 = vpop.f32.mrb[8].mxu0 }
 0x18d   : > { %v764_v56 = vpop.f32.mrb[9].mxu0  ;;  %2219 = vmatprep.subr.bf16.mxu1 %v2218_v61  ;;  %v763_v57 = vadd.f32 %v1856_v40, %v762_v55  ;;  %v2288_v55 = vpack.c.bf16 %v1081_v42, %v1080_v53  ;;  %v1102_v53 = vld [vmem:[%s3492_s4 + $0x210] sm:$0xff]  ;;  %v1103_v42 = vld [vmem:[%s3492_s4 + $0x218] sm:$0xff] }
 0x18e   : > { %2221 = vmatpush3.bf16.msra.mxu1 %v2218_v61  ;;  %v2286_v61 = vpack.c.bf16 %v1097_v51, %v1096_v49  ;;  %v1062_v56 = vld [vmem:[%s3492_s4 + $0xd0] sm:$0xff] }
 0x18f   : > { %v785_v59 = vmax.f32 %v763_v57, 0.0  ;;  %v1063_v57 = vld [vmem:[%s3492_s4 + $0xd8] sm:$0xff] }
 0x190   : > { %v767_v52 = vpop.f32.mrb[10].mxu0  ;;  %2287 = vmatprep.subr.bf16.mxu0 %v2286_v61 }
 0x191   : > { %v768_v58 = vadd.f32 %v1856_v40, %v767_v52  ;;  %v769_v5 = vpop.f32.mrb[11].mxu0  ;;  %v2250_v52 = vpack.c.bf16 %v1063_v57, %v1062_v56  ;;  %2289 = vmatpush3.bf16.msra.mxu0 %v2288_v55  ;;  %v946_v55 = vpop.permute.xlu1 %945 }
 0x192   : > { %v1047_v5 = vld [vmem:[%s3492_s4 + $0x58] sm:$0xff] }
 0x193   : > { %v786_v60 = vmax.f32 %v768_v58, 0.0  ;;  %v1046_v58 = vld [vmem:[%s3492_s4 + $0x50] sm:$0xff] }
 0x194   : > { %v772_v8 = vpop.f32.mrb[12].mxu0 }
 0x195   : > { %v2222_v17 = vpack.c.bf16 %v786_v60, %v785_v59  ;;  %v774_v18 = vpop.f32.mrb[13].mxu0  ;;  %v773_v30 = vadd.f32 %v1856_v40, %v772_v8  ;;  %v1098_v59 = vld [vmem:[%s3492_s4 + $0x1f0] sm:$0xff]  ;;  %v2252_v60 = vpack.c.bf16 %v1047_v5, %v1046_v58  ;;  %v1099_v8 = vld [vmem:[%s3492_s4 + $0x1f8] sm:$0xff] }
 0x196   : > { %v1083_v18 = vld [vmem:[%s3492_s4 + $0x178] sm:$0xff] }
 0x197   : > { %2223 = vmatprep.subr.bf16.mxu1 %v2222_v17  ;;  %v787_v2 = vmax.f32 %v773_v30, 0.0  ;;  %v2290_v30 = vpack.c.bf16 %v1099_v8, %v1098_v59  ;;  %v2298_v59 = vpack.c.bf16 %v1103_v42, %v1102_v53  ;;  %v1104_v8 = vld [vmem:[%s3492_s4 + $0x220] sm:$0xff] }
 0x198   : > { %v777_v62 = vpop.f32.mrb[14].mxu0  ;;  %2225 = vmatpush3.bf16.msra.mxu1 %v2222_v17  ;;  %v1082_v17 = vld [vmem:[%s3492_s4 + $0x170] sm:$0xff] }
 0x199   : > { %v778_v19 = vadd.f32 %v1856_v40, %v777_v62  ;;  %v779_v63 = vpop.f32.mrb[15].mxu0  ;;  %v2242_v40 = vpack.c.bf16 %v1059_v36, %v1058_v28  ;;  %v2292_v62 = vpack.c.bf16 %v1083_v18, %v1082_v17  ;;  %2291 = vmatprep.subr.bf16.mxu0 %v2290_v30  ;;  %v1105_v17 = vld [vmem:[%s3492_s4 + $0x228] sm:$0xff] }
 0x19a   : > { %v1065_v63 = vld [vmem:[%s3492_s4 + $0xe8] sm:$0xff]  ;;  %v2302_v30 = vpack.c.bf16 %v1105_v17, %v1104_v8 }
 0x19b   : > { %v788_v6 = vmax.f32 %v778_v19, 0.0  ;;  %v1064_v19 = vld [vmem:[%s3492_s4 + $0xe0] sm:$0xff]  ;;  %2293 = vmatpush3.bf16.msra.mxu0 %v2292_v62  ;;  %v951_v62 = vpop.permute.xlu1 %950 }
 0x19c   : > { %v2254_v0 = vpack.c.bf16 %v1065_v63, %v1064_v19  ;;  %v1106_v63 = vld [vmem:[%s3492_s4 + $0x230] sm:$0xff] }
 0x19d   : > { %v2226_v3 = vpack.c.bf16 %v788_v6, %v787_v2  ;;  %v1049_v2 = vld [vmem:[%s3492_s4 + $0x68] sm:$0xff] }
 0x19e   : > { %v2256_v6 = vpack.c.bf16 %v1049_v2, %v1048_v1 }
 0x19f   : > { %2227 = vmatprep.subr.bf16.mxu1 %v2226_v3  ;;  %v956_v10 = vpop.permute.xlu1 %955 }
 0x1a0   : > { %2229 = vmatpush3.bf16.msra.mxu1 %v2226_v3  ;;  %v1066_v3 = vld [vmem:[%s3492_s4 + $0xf0] sm:$0xff] }
 0x1a1   : > { %2231 = vmatprep.subr.bf16.mxu1 %v2230_v4  ;;  %v1067_v4 = vld [vmem:[%s3492_s4 + $0xf8] sm:$0xff] }
 0x1a2   : > { %v2258_v9 = vpack.c.bf16 %v1067_v4, %v1066_v3  ;;  %v1108_v4 = vld [vmem:[%s3492_s4 + $0x240] sm:$0xff] }
 0x1a3   : > { %2096 = vmatmul.mubr.msk.f32.vlgmr.msra.gmra.mrb[0].mxu1 %vm612_vm2, %v790_v14  ;;  %v1100_v14 = vld [vmem:[%s3492_s4 + $0x200] sm:$0xff] }
 0x1a4   : > { %2098 = vmatprep.mubr.msk.f32.mxu1 %vm612_vm2, %v791_v16  ;;  %2233 = vmatpush3.bf16.msra.mxu1 %v2232_v15  ;;  %v1101_v15 = vld [vmem:[%s3492_s4 + $0x208] sm:$0xff] }
 0x1a5   : > { %2235 = vmatprep.subr.bf16.mxu1 %v2234_v20  ;;  %v2294_v16 = vpack.c.bf16 %v1101_v15, %v1100_v14 }
 0x1a7   : > { %2099 = vmatmul.mubr.msk.f32.gmra.mrb[2].mxu1 %vm612_vm2, %v792_v27 }
 0x1a8   : > { %2101 = vmatprep.mubr.msk.f32.mxu1 %vm612_vm2, %v793_v31  ;;  %2237 = vmatpush3.bf16.msra.mxu1 %v2236_v29 }
 0x1a9   : > { %2239 = vmatprep.subr.bf16.mxu1 %v2238_v32 }
 0x1ab   : > { %2102 = vmatmul.mubr.msk.f32.gmra.mrb[4].mxu1 %vm612_vm2, %v794_v34 }
 0x1ac   : > { %2104 = vmatprep.mubr.msk.f32.mxu1 %vm612_vm2, %v795_v39  ;;  %2241 = vmatpush3.bf16.msra.mxu1 %v2240_v38 }
 0x1ad   : > { %2243 = vmatprep.subr.bf16.mxu1 %v2242_v40 }
 0x1af   : > { %2105 = vmatmul.mubr.msk.f32.gmra.mrb[6].mxu1 %vm612_vm2, %v796_v43 }
 0x1b0   : > { %2245 = vmatpush3.bf16.msra.mxu1 %v2244_v44 }
 0x1b1   : > { %2247 = vmatprep.subr.bf16.mxu1 %v2246_v41  ;;  %v983_v41 = vpop.permute.xlu0 %982 }
 0x1b4   : > { %2249 = vmatpush3.bf16.msra.mxu1 %v2248_v50 }
 0x1b5   : > { %2251 = vmatprep.subr.bf16.mxu1 %v2250_v52  ;;  %v988_v58 = vpop.permute.xlu0 %987 }
 0x1b8   : > { %2253 = vmatpush3.bf16.msra.mxu1 %v2252_v60 }
 0x1b9   : > { %2255 = vmatprep.subr.bf16.mxu1 %v2254_v0  ;;  %v1107_v0 = vld [vmem:[%s3492_s4 + $0x238] sm:$0xff]  ;;  %v993_v1 = vpop.permute.xlu0 %992 }
 0x1bc   : > { %2257 = vmatpush3.bf16.msra.mxu1 %v2256_v6  ;;  %v2306_v6 = vpack.c.bf16 %v1107_v0, %v1106_v63 }
 0x1bd   : > { %2259 = vmatprep.subr.bf16.mxu1 %v2258_v9  ;;  %v1109_v9 = vld [vmem:[%s3492_s4 + $0x248] sm:$0xff]  ;;  %v1015_v11 = vpop.permute.xlu0 %1014 }
 0x1be   : > { %v2310_v14 = vpack.c.bf16 %v1109_v9, %v1108_v4 }
 0x1c0   : > { %2261 = vmatpush3.bf16.msra.mxu1 %v2260_v12 }
 0x1c1   : > { %2295 = vmatprep.subr.bf16.mxu1 %v2294_v16 }
 0x276   : > { %v2097_v20 = vpop.f32.mrb[0].mxu1 }
 0x277   : > { %v927_v21 = vrot.slane %v2097_v20, 7  ;;  %v1000_v22 = vrot.slane %v2097_v20, 1  ;;  %v887_v23 = vpop.f32.mrb[1].mxu1 }
 0x278   : > { %v926_v24 = vrot.slane %v887_v23, 7  ;;  %v999_v27 = vrot.slane %v887_v23, 1 }
 0x27a   : > { %v2100_v29 = vpop.f32.mrb[2].mxu1  ;;  %v932_v31 = vsel %vm441_vm0, %v926_v24, %v927_v21  ;;  %v3202_v32 = vsel %vm514_vm1, %v999_v27, %v1000_v22 }
 0x27b   : > { %v929_v13 = vrot.slane %v2100_v29, 7  ;;  %v1002_v28 = vrot.slane %v2100_v29, 1  ;;  %v897_v36 = vpop.f32.mrb[3].mxu1  ;;  %v959_v18 = vmul.f32 %v946_v55, %v932_v31  ;;  %v1032_v15 = vmul.f32 %v1015_v11, %v3202_v32  ;;  %v1020_v32 = vpop.permute.xlu1 %1019 }
 0x27c   : > { %v928_v34 = vrot.slane %v897_v36, 7  ;;  %v1001_v38 = vrot.slane %v897_v36, 1 }
 0x27d   : > { %v933_v39 = vsel %vm441_vm0, %v929_v13, %v926_v24  ;;  %v3208_v40 = vsel %vm514_vm1, %v1002_v28, %v999_v27  ;;  %v1114_v27 = vld [vmem:[%s3492_s4 + $0x270] sm:$0xff] }
 0x27e   : > { %v3212_v35 = vsel %vm514_vm1, %v1000_v22, %v1001_v38  ;;  %v2103_v25 = vpop.f32.mrb[4].mxu1  ;;  %v931_v43 = vsel %vm441_vm0, %v927_v21, %v928_v34  ;;  %v930_v44 = vsel %vm441_vm0, %v928_v34, %v929_v13  ;;  %v3220_v47 = vsel %vm514_vm1, %v1001_v38, %v1002_v28  ;;  %v1112_v22 = vld [vmem:[%s3492_s4 + $0x260] sm:$0xff] }
 0x27f   : > { %v963_v26 = vrot.slane %v2103_v25, 7  ;;  %v907_v45 = vpop.f32.mrb[5].mxu1  ;;  %v958_v5 = vmul.f32 %v941_v37, %v933_v39  ;;  %v960_v2 = vmul.f32 %v951_v62, %v931_v43  ;;  %v961_v12 = vmul.f32 %v956_v10, %v930_v44  ;;  %v1382_v38 = vld [vmem:[%s3499_s11] sm:$0xff] }
 0x280   : > { %v962_v46 = vrot.slane %v907_v45, 7  ;;  %1272 = vmatprep.mubr.f32.mxu0 %v907_v45  ;;  %v1033_v13 = vmul.f32 %v1020_v32, %v3212_v35  ;;  %v1596_v32 = vld [vmem:[%s3496_s8 + $0x120] sm:$0xff] }
 0x281   : > { %1273 = vmatmul.mubr.f32.vlgmr.msra.gmra.mrb[16].mxu0 %v887_v23  ;;  %v1113_v23 = vld [vmem:[%s3492_s4 + $0x268] sm:$0xff] }
 0x282   : > { %v2106_v48 = vpop.f32.mrb[6].mxu1  ;;  %1277 = vmatprep.mubr.f32.mxu0 %v2103_v25  ;;  %v968_v54 = vsel %vm441_vm0, %v962_v46, %v963_v26  ;;  %v2318_v24 = vpack.c.bf16 %v1113_v23, %v1112_v22  ;;  %v1594_v22 = vld [vmem:[%s3496_s8 + $0x110] sm:$0xff]  ;;  %v1595_v23 = vld [vmem:[%s3496_s8 + $0x118] sm:$0xff] }
 0x283   : > { %v965_v49 = vrot.slane %v2106_v48, 7  ;;  %v917_v50 = vpop.f32.mrb[7].mxu1  ;;  %v996_v60 = vmul.f32 %v983_v41, %v968_v54 }
 0x284   : > { %v964_v51 = vrot.slane %v917_v50, 7 }
 0x285   : > { %1278 = vmatmul.mubr.f32.gmra.mrb[18].mxu0 %v2097_v20  ;;  %v969_v61 = vsel %vm441_vm0, %v965_v49, %v962_v46  ;;  %v1111_v20 = vld [vmem:[%s3492_s4 + $0x258] sm:$0xff] }
 0x286   : > { %1282 = vmatprep.mubr.f32.mxu0 %v917_v50  ;;  %v995_v56 = vmul.f32 %v978_v33, %v969_v61  ;;  %v967_v57 = vsel %vm441_vm0, %v963_v26, %v964_v51  ;;  %v966_v52 = vsel %vm441_vm0, %v964_v51, %v965_v49  ;;  %v1025_v33 = vpop.permute.xlu0 %1024 }
 0x287   : > { %v997_v19 = vmul.f32 %v988_v58, %v967_v57  ;;  %v998_v3 = vmul.f32 %v993_v1, %v966_v52  ;;  %v1034_v28 = vmul.f32 %v1025_v33, %v3220_v47  ;;  %v1597_v33 = vld [vmem:[%s3496_s8 + $0x128] sm:$0xff] }
 0x288   : > { %1187 = vmatprep.mubr.f32.mxu1 %v995_v56 }
 0x289   : > { %1188 = vmatmul.mubr.f32.vlgmr.msra.gmra.mrb[8].mxu1 %v958_v5  ;;  %1283 = vmatmul.mubr.f32.gmra.mrb[20].mxu0 %v897_v36  ;;  %v1030_v36 = vpop.permute.xlu1 %1029 }
 0x28a   : > { %2297 = vmatpush3.bf16.msra.mxu1 %v2294_v16  ;;  %1192 = vmatprep.mubr.f32.mxu1 %v996_v60  ;;  %v1110_v16 = vld [vmem:[%s3492_s4 + $0x250] sm:$0xff]  ;;  %v1035_v34 = vmul.f32 %v1030_v36, %v3208_v40  ;;  %v1881_v40 = vld [vmem:[%s3493_s5] ss:$0 sm:$0xff]  ;;  %v1599_v36 = vld [vmem:[%s3496_s8 + $0x138] sm:$0xff] }
 0x28b   : > { %1287 = vmatprep.mubr.f32.mxu0 %v2106_v48  ;;  %2299 = vmatprep.subr.bf16.mxu1 %v2298_v59  ;;  %v2314_v21 = vpack.c.bf16 %v1111_v20, %v1110_v16 }
 0x28d   : > { %1193 = vmatmul.mubr.f32.gmra.mrb[10].mxu1 %v959_v18  ;;  %1288 = vmatmul.mubr.f32.gmra.mrb[22].mxu0 %v2100_v29  ;;  %v1115_v29 = vld [vmem:[%s3492_s4 + $0x278] sm:$0xff] }
 0x28e   : > { %2301 = vmatpush3.bf16.msra.mxu1 %v2298_v59  ;;  %1197 = vmatprep.mubr.f32.mxu1 %v997_v19  ;;  %v2322_v31 = vpack.c.bf16 %v1115_v29, %v1114_v27  ;;  %v1384_v27 = vld [vmem:[%s3499_s11 + $0x10] sm:$0xff]  ;;  %v2370_v29 = vpack.c.bf16 %v1595_v23, %v1594_v22 }
 0x28f   : > { %2303 = vmatprep.subr.bf16.mxu1 %v2302_v30 }
 0x291   : > { %1198 = vmatmul.mubr.f32.gmra.mrb[12].mxu1 %v960_v2 }
 0x292   : > { %2305 = vmatpush3.bf16.msra.mxu1 %v2302_v30  ;;  %1202 = vmatprep.mubr.f32.mxu1 %v998_v3 }
 0x293   : > { %2307 = vmatprep.subr.bf16.mxu1 %v2306_v6 }
 0x295   : > { %1203 = vmatmul.mubr.f32.gmra.mrb[14].mxu1 %v961_v12 }
 0x296   : > { %2309 = vmatpush3.bf16.msra.mxu1 %v2306_v6  ;;  %2139 = vmatprep.mubr.f32.mxu1 %v1032_v15  ;;  %v1593_v15 = vld [vmem:[%s3496_s8 + $0x108] sm:$0xff] }
 0x297   : > { %2311 = vmatprep.subr.bf16.mxu1 %v2310_v14 }
 0x29a   : > { %2313 = vmatpush3.bf16.msra.mxu1 %v2310_v14  ;;  %v1592_v14 = vld [vmem:[%s3496_s8 + $0x100] sm:$0xff] }
 0x29b   : > { %2315 = vmatprep.subr.bf16.mxu1 %v2314_v21 }
 0x29e   : > { %2317 = vmatpush3.bf16.msra.mxu1 %v2314_v21  ;;  %v2366_v21 = vpack.c.bf16 %v1593_v15, %v1592_v14  ;;  %v1591_v14 = vld [vmem:[%s3496_s8 + $0xf8] sm:$0xff] }
 0x29f   : > { %2319 = vmatprep.subr.bf16.mxu1 %v2318_v24 }
 0x2a2   : > { %2321 = vmatpush3.bf16.msra.mxu1 %v2318_v24  ;;  %v1383_v24 = vld [vmem:[%s3499_s11 + $0x8] sm:$0xff] }
 0x2a3   : > { %2323 = vmatprep.subr.bf16.mxu1 %v2322_v31 }
 0x2a6   : > { %2325 = vmatpush3.bf16.msra.mxu1 %v2322_v31  ;;  %v1385_v31 = vld [vmem:[%s3499_s11 + $0x18] sm:$0xff] }
 0x2a9   : > { %2140 = vmatmul.mubr.f32.vlgmr.msra.gmra.mrb[16].mxu1 %v1033_v13  ;;  %v2374_v13 = vpack.c.bf16 %v1597_v33, %v1596_v32 }
 0x2aa   : > { %2142 = vmatprep.mubr.f32.mxu1 %v1034_v28  ;;  %v1598_v28 = vld [vmem:[%s3496_s8 + $0x130] sm:$0xff] }
 0x2ad   : > { %2143 = vmatmul.mubr.f32.gmra.mrb[18].mxu1 %v1035_v34  ;;  %v2378_v34 = vpack.c.bf16 %v1599_v36, %v1598_v28 }
 0x2ae   : > { %2153 = vmatprep.mubr.msk.f32.mxu1 %vm1386_vm3, %v1382_v38  ;;  %v1576_v38 = vld [vmem:[%s3496_s8 + $0x80] sm:$0xff] }
 0x354   : > { %v1991_v39 = vpop.f32.mrb[16].mxu0 }
 0x355   : > { %v1992_v25 = vpop.f32.mrb[17].mxu0 }
 0x356   : > { %v1993_v43 = vadd.f32 %v1992_v25, %v1991_v39  ;;  %v1577_v39 = vld [vmem:[%s3496_s8 + $0x88] sm:$0xff]  ;;  %v1560_v25 = vld [vmem:[%s3496_s8] sm:$0xff] }
 0x358   : > { %v1994_v44 = vpop.f32.mrb[18].mxu0 }
 0x359   : > { %v1995_v35 = vpop.f32.mrb[19].mxu0 }
 0x35a   : > { %v1996_v26 = vadd.f32 %v1995_v35, %v1994_v44  ;;  %v1561_v44 = vld [vmem:[%s3496_s8 + $0x8] sm:$0xff]  ;;  %v1578_v35 = vld [vmem:[%s3496_s8 + $0x90] sm:$0xff] }
 0x35c   : > { %v1947_v45 = vpop.f32.mrb[8].mxu1  ;;  %v1997_v37 = vpop.f32.mrb[20].mxu0 }
 0x35d   : > { %v1948_v46 = vpop.f32.mrb[9].mxu1  ;;  %v1998_v47 = vpop.f32.mrb[21].mxu0 }
 0x35e   : > { %v1949_v41 = vadd.f32 %v1948_v46, %v1947_v45  ;;  %v1999_v48 = vadd.f32 %v1998_v47, %v1997_v37  ;;  %v2336_v45 = vpack.c.bf16 %v1561_v44, %v1560_v25  ;;  %v1563_v46 = vld [vmem:[%s3496_s8 + $0x18] sm:$0xff]  ;;  %v1580_v47 = vld [vmem:[%s3496_s8 + $0xa0] sm:$0xff] }
 0x360   : > { %v1190_v54 = vadd.f32 %v1949_v41, %v1881_v40  ;;  %v1950_v49 = vpop.f32.mrb[10].mxu1  ;;  %v2000_v50 = vpop.f32.mrb[22].mxu0  ;;  %v1581_v41 = vld [vmem:[%s3496_s8 + $0xa8] sm:$0xff] }
 0x361   : > { %v1951_v51 = vpop.f32.mrb[11].mxu1  ;;  %v2001_v53 = vpop.f32.mrb[23].mxu0 }
 0x362   : > { %v1952_v42 = vadd.f32 %v1951_v51, %v1950_v49  ;;  %v2002_v61 = vadd.f32 %v2001_v53, %v2000_v50  ;;  %v1275_v55 = vadd.f32 %v1993_v43, %v1190_v54  ;;  %v2334_v43 = vpack.c.bf16 %v1577_v39, %v1576_v38  ;;  %v1564_v49 = vld [vmem:[%s3496_s8 + $0x20] sm:$0xff]  ;;  %v1565_v50 = vld [vmem:[%s3496_s8 + $0x28] sm:$0xff]  ;;  %v1582_v51 = vld [vmem:[%s3496_s8 + $0xb0] sm:$0xff] }
 0x363   : > { %v2342_v54 = vpack.c.bf16 %v1581_v41, %v1580_v47  ;;  %v1583_v53 = vld [vmem:[%s3496_s8 + $0xb8] sm:$0xff] }
 0x364   : > { %v1195_v56 = vadd.f32 %v1952_v42, %v1881_v40  ;;  %v1953_v57 = vpop.f32.mrb[12].mxu1  ;;  %2335 = vmatprep.subr.bf16.mxu0 %v2334_v43  ;;  %v2344_v42 = vpack.c.bf16 %v1565_v50, %v1564_v49 }
 0x365   : > { %v1954_v52 = vpop.f32.mrb[13].mxu1  ;;  %2337 = vmatpush3.bf16.msra.mxu0 %v2336_v45 }
 0x366   : > { %v1955_v58 = vadd.f32 %v1954_v52, %v1953_v57  ;;  %v1280_v5 = vadd.f32 %v1996_v26, %v1195_v56  ;;  %v1579_v26 = vld [vmem:[%s3496_s8 + $0x98] sm:$0xff]  ;;  %v1584_v57 = vld [vmem:[%s3496_s8 + $0xc0] sm:$0xff]  ;;  %v1585_v52 = vld [vmem:[%s3496_s8 + $0xc8] sm:$0xff] }
 0x367   : > { %v2338_v37 = vpack.c.bf16 %v1579_v26, %v1578_v35  ;;  %v1567_v56 = vld [vmem:[%s3496_s8 + $0x38] sm:$0xff]  ;;  %v1517_v35 = vpop.permute.xlu1 %1516 }
 0x368   : > { %v1200_v59 = vadd.f32 %v1955_v58, %v1881_v40  ;;  %v1956_v60 = vpop.f32.mrb[14].mxu1 }
 0x369   : > { %v1957_v8 = vpop.f32.mrb[15].mxu1  ;;  %2339 = vmatprep.subr.bf16.mxu0 %v2338_v37 }
 0x36a   : > { %v1958_v17 = vadd.f32 %v1957_v8, %v1956_v60  ;;  %v1285_v18 = vadd.f32 %v1999_v48, %v1200_v59  ;;  %v1568_v59 = vld [vmem:[%s3496_s8 + $0x40] sm:$0xff]  ;;  %v1569_v60 = vld [vmem:[%s3496_s8 + $0x48] sm:$0xff]  ;;  %v1586_v8 = vld [vmem:[%s3496_s8 + $0xd0] sm:$0xff] }
 0x36b   : > { %v1498_v41 = vpop.permute.xlu1 %1497 }
 0x36c   : > { %v1205_v30 = vadd.f32 %v1958_v17, %v1881_v40  ;;  %v1562_v40 = vld [vmem:[%s3496_s8 + $0x10] sm:$0xff]  ;;  %v1587_v17 = vld [vmem:[%s3496_s8 + $0xd8] sm:$0xff] }
 0x36d   : > { %v2340_v48 = vpack.c.bf16 %v1563_v46, %v1562_v40 }
 0x36e   : > { %v1290_v62 = vadd.f32 %v2002_v61, %v1205_v30  ;;  %v2346_v61 = vpack.c.bf16 %v1583_v53, %v1582_v51  ;;  %v2354_v30 = vpack.c.bf16 %v1587_v17, %v1586_v8 }
 0x36f   : > { %2341 = vmatpush3.bf16.msra.mxu0 %v2340_v48 }
 0x370   : > { %2343 = vmatprep.subr.bf16.mxu0 %v2342_v54 }
 0x373   : > { %2345 = vmatpush3.bf16.msra.mxu0 %v2344_v42 }
 0x374   : > { %2347 = vmatprep.subr.bf16.mxu0 %v2346_v61 }
 0x37c   : > { %v2141_v19 = vpop.f32.mrb[16].mxu1 }
 0x37d   : > { %v1365_v63 = vadd.f32 %v2141_v19, %v1280_v5  ;;  %v1359_v0 = vpop.f32.mrb[17].mxu1  ;;  %v2350_v5 = vpack.c.bf16 %v1585_v52, %v1584_v57  ;;  %v1571_v19 = vld [vmem:[%s3496_s8 + $0x58] sm:$0xff] }
 0x37e   : > { %v1360_v1 = vadd.f32 %v1359_v0, %v1275_v55  ;;  %v1566_v55 = vld [vmem:[%s3496_s8 + $0x30] sm:$0xff]  ;;  %v1589_v0 = vld [vmem:[%s3496_s8 + $0xe8] sm:$0xff] }
 0x37f   : > { %v1379_v2 = vmax.f32 %v1365_v63, 0.0  ;;  %v2348_v58 = vpack.c.bf16 %v1567_v56, %v1566_v55  ;;  %v1588_v63 = vld [vmem:[%s3496_s8 + $0xe0] sm:$0xff] }
 0x380   : > { %v1378_v6 = vmax.f32 %v1360_v1, 0.0  ;;  %v2144_v3 = vpop.f32.mrb[18].mxu1 }
 0x381   : > { %v1375_v4 = vadd.f32 %v2144_v3, %v1290_v62  ;;  %v1369_v9 = vpop.f32.mrb[19].mxu1  ;;  %2349 = vmatpush3.bf16.msra.mxu0 %v2348_v58  ;;  %v1570_v62 = vld [vmem:[%s3496_s8 + $0x50] sm:$0xff]  ;;  %v1573_v3 = vld [vmem:[%s3496_s8 + $0x68] sm:$0xff] }
 0x382   : > { %v2326_v10 = vpack.c.bf16 %v1379_v2, %v1378_v6  ;;  %v1370_v11 = vadd.f32 %v1369_v9, %v1285_v18  ;;  %v2352_v18 = vpack.c.bf16 %v1569_v60, %v1568_v59  ;;  %2351 = vmatprep.subr.bf16.mxu0 %v2350_v5  ;;  %v2356_v1 = vpack.c.bf16 %v1571_v19, %v1570_v62  ;;  %v1572_v6 = vld [vmem:[%s3496_s8 + $0x60] sm:$0xff]  ;;  %v1512_v9 = vpop.permute.xlu0 %1511 }
 0x383   : > { %v1381_v12 = vmax.f32 %v1375_v4, 0.0  ;;  %v2358_v2 = vpack.c.bf16 %v1589_v0, %v1588_v63  ;;  %v2360_v4 = vpack.c.bf16 %v1573_v3, %v1572_v6  ;;  %v1890_v59 = vld [vmem:[%s3497_s9] ss:$0 sm:$0xff] }
 0x384   : > { %v1380_v16 = vmax.f32 %v1370_v11, 0.0  ;;  %2327 = vmatprep.subr.bf16.mxu1 %v2326_v10 }
 0x385   : > { %2329 = vmatpush3.bf16.msra.mxu1 %v2326_v10  ;;  %2353 = vmatpush3.bf16.msra.mxu0 %v2352_v18 }
 0x386   : > { %v2330_v20 = vpack.c.bf16 %v1381_v12, %v1380_v16  ;;  %2355 = vmatprep.subr.bf16.mxu0 %v2354_v30  ;;  %v1493_v10 = vpop.permute.xlu0 %1492  ;;  %v1590_v12 = vld [vmem:[%s3496_s8 + $0xf0] sm:$0xff] }
 0x387   : > { %v2362_v15 = vpack.c.bf16 %v1591_v14, %v1590_v12  ;;  %v1574_v16 = vld [vmem:[%s3496_s8 + $0x70] sm:$0xff] }
 0x388   : > { %2331 = vmatprep.subr.bf16.mxu1 %v2330_v20 }
 0x389   : > { %2333 = vmatpush3.bf16.msra.mxu1 %v2330_v20  ;;  %2357 = vmatpush3.bf16.msra.mxu0 %v2356_v1  ;;  %v1575_v20 = vld [vmem:[%s3496_s8 + $0x78] sm:$0xff] }
 0x38a   : > { %2367 = vmatprep.subr.bf16.mxu1 %v2366_v21  ;;  %2359 = vmatprep.subr.bf16.mxu0 %v2358_v2  ;;  %v1531_v11 = vpop.permute.xlu0 %1530  ;;  %v2364_v22 = vpack.c.bf16 %v1575_v20, %v1574_v16 }
 0x38c   : > { %2154 = vmatmul.mubr.msk.f32.vlgmr.msra.gmra.mrb[20].mxu1 %vm1386_vm3, %v1383_v24 }
 0x38d   : > { %2156 = vmatprep.mubr.msk.f32.mxu1 %vm1386_vm3, %v1384_v27  ;;  %2369 = vmatpush3.bf16.msra.mxu1 %v2366_v21 }
 0x38e   : > { %2371 = vmatprep.subr.bf16.mxu1 %v2370_v29  ;;  %2361 = vmatpush3.bf16.msra.mxu0 %v2360_v4  ;;  %v1536_v32 = vpop.permute.xlu0 %1535 }
 0x38f   : > { %2363 = vmatprep.subr.bf16.mxu0 %v2362_v15 }
 0x390   : > { %2157 = vmatmul.mubr.msk.f32.gmra.mrb[22].mxu1 %vm1386_vm3, %v1385_v31 }
 0x391   : > { %2373 = vmatpush3.bf16.msra.mxu1 %v2370_v29 }
 0x392   : > { %2375 = vmatprep.subr.bf16.mxu1 %v2374_v13  ;;  %2365 = vmatpush3.bf16.msra.mxu0 %v2364_v22 }
 0x395   : > { %2377 = vmatpush3.bf16.msra.mxu1 %v2374_v13 }
 0x396   : > { %2379 = vmatprep.subr.bf16.mxu1 %v2378_v34 }
 0x399   : > { %2381 = vmatpush3.bf16.msra.mxu1 %v2378_v34 }
 0x45f   : > { %v2155_v21 = vpop.f32.mrb[20].mxu1 }
 0x460   : > { %v1485_v23 = vrot.slane %v2155_v21, 7  ;;  %v1522_v24 = vrot.slane %v2155_v21, 1  ;;  %v1465_v27 = vpop.f32.mrb[21].mxu1 }
 0x461   : > { %v1484_v29 = vrot.slane %v1465_v27, 7  ;;  %v1521_v31 = vrot.slane %v1465_v27, 1 }
 0x463   : > { %v1487_v33 = vsel %vm441_vm0, %v1485_v23, %v1484_v29  ;;  %v1523_v13 = vsel %vm514_vm1, %v1521_v31, %v1522_v24  ;;  %v1524_v28 = vsel %vm514_vm1, %v1522_v24, %v1521_v31  ;;  %v2158_v36 = vpop.f32.mrb[22].mxu1  ;;  %v1486_v34 = vsel %vm441_vm0, %v1484_v29, %v1485_v23 }
 0x464   : > { %v1539_v38 = vmul.f32 %v1536_v32, %v1524_v28  ;;  %v1503_v39 = vrot.slane %v2158_v36, 7  ;;  %v1475_v25 = vpop.f32.mrb[23].mxu1  ;;  %v1538_v43 = vmul.f32 %v1531_v11, %v1523_v13  ;;  %v1500_v54 = vmul.f32 %v1493_v10, %v1487_v33 }
 0x465   : > { %v1502_v44 = vrot.slane %v1475_v25, 7  ;;  %v1501_v55 = vmul.f32 %v1498_v41, %v1486_v34 }
 0x466   : > { %2175 = vmatprep.mubr.msk.f32.mxu1 %vm612_vm2, %v1538_v43 }
 0x467   : > { %v1505_v26 = vsel %vm441_vm0, %v1503_v39, %v1502_v44  ;;  %v1504_v45 = vsel %vm441_vm0, %v1502_v44, %v1503_v39  ;;  %2176 = vmatmul.mubr.msk.f32.vlgmr.msra.gmra.mrb[24].mxu1 %vm612_vm2, %v1539_v38 }
 0x468   : > { %v1519_v37 = vmul.f32 %v1512_v9, %v1505_v26  ;;  %v1520_v40 = vmul.f32 %v1517_v35, %v1504_v45 }
 0x46a   : > { %v2438_v46 = vpack.i.bf16 %v1519_v37, %v1475_v25  ;;  %v2443_v47 = vpack.i.bf16 %v1520_v40, %v2158_v36 }
 0x46c   : > { %2439 = vrot.lane.b32.xlu1 %v2438_v46, %s3511_s18 }
 0x470   : > { %2444 = vrot.lane.b32.xlu1 %v2443_v47, %s3511_s18  ;;  %s405_s18 = sand.u32 1, %s2502_s22  }
 0x471   : > { %s1845_s15 = sshll.u32 %s405_s18, 4  ;;  %s3447_s29 = scalar_lea.sflag [#allocation3], %s405_s18 }
 0x472   : > { %s407_s17 = scalar_lea.vmem [#allocation2], %s1845_s15 }
 0x473   : > { %s1779_s20 = sshll.u32 %s407_s17, 4  ;;  %s3440_s20 = int_to_ptr.vmem [resolvable:$true] %s1779_s20 }
 0x474   : > { %s2448_s28 = scalar_lea.vmem %s3440_s20, 256  ;;  %p2455_p0 = scmp.lt.s32.totalorder %s3440_s20, %s2453_s16 }
 0x475   : > { %p2449_p11 = scmp.ne.s32.totalorder %s3440_s20, %s2448_s28  ;;  %p2456_p1 = scmp.lt.s32.totalorder %s2454_s19, %s2448_s28 }
 0x477   : > { %p2450_p12 = pnand %p2449_p11, %p2621_p5  ;;  %p2457_p2 = por %p2456_p1, %p2455_p0 }
 0x479   : > { %p2451_p13 = pneg %p2450_p12 }
 0x47b   : > { %p2458_p3 = pnand %p2457_p2, %p2451_p13 }
 0x4de   : > { %v2440_v48 = vpop.permute.xlu1 %2439 }
 0x4df   : > { %v2442_v49 = vunpack.i.h.bf16 %v2440_v48  ;;  %v2441_v50 = vunpack.i.l.bf16 %v2440_v48 }
 0x4e1   : > { %v1558_v51 = vsel %vm612_vm2, %v1465_v27, %v2441_v50  ;;  %v1556_v7 = vsel %vm612_vm2, %v1500_v54, %v2442_v49 }
 0x4e2   : > { %1677 = vmatprep.mubr.f32.mxu0 %v1558_v51  ;;  %v2445_v53 = vpop.permute.xlu1 %2444 }
 0x4e3   : > { %v2447_v42 = vunpack.i.h.bf16 %v2445_v53  ;;  %v2446_v61 = vunpack.i.l.bf16 %v2445_v53  ;;  %1678 = vmatmul.mubr.f32.vlgmr.msra.gmra.mrb[24].mxu0 %v1556_v7 }
 0x4e5   : > { %v1559_v56 = vsel %vm612_vm2, %v2155_v21, %v2446_v61  ;;  %v1557_v57 = vsel %vm612_vm2, %v1501_v55, %v2447_v42 }
 0x4e6   : > { %1682 = vmatprep.mubr.f32.mxu0 %v1559_v56 }
 0x4e7   : > { %1683 = vmatmul.mubr.f32.gmra.mrb[26].mxu0 %v1557_v57 }
 0x53a   : > { %v2177_v52 = vpop.f32.mrb[24].mxu1 }
 0x53b   : > { %v1754_v58 = vpop.f32.mrb[25].mxu1 }
 0x5b6   : > { %v2063_v5 = vpop.f32.mrb[24].mxu0 }
 0x5b7   : > { %v2064_v60 = vpop.f32.mrb[25].mxu0 }
 0x5b8   : > { %v2065_v8 = vadd.f32 %v2064_v60, %v2063_v5 }
 0x5ba   : > { %v1680_v17 = vadd.f32 %v2065_v8, %v1890_v59  ;;  %v2066_v18 = vpop.f32.mrb[26].mxu0 }
 0x5bb   : > { %v2067_v30 = vpop.f32.mrb[27].mxu0 }
 0x5bc   : > { %v1755_v62 = vadd.f32 %v1754_v58, %v1680_v17  ;;  %v2068_v19 = vadd.f32 %v2067_v30, %v2066_v18 }
 0x5be   : > { %1763 = vst [vmem:[%s407_s17] sm:$0xff] %v1755_v62  ;;  %v1685_v63 = vadd.f32 %v2068_v19, %v1890_v59 }
 0x5c0   : > { %v1760_v0 = vadd.f32 %v2177_v52, %v1685_v63 }
 0x5c2   : > { %1764 = vst [vmem:[%s407_s17 + $0x8] sm:$0xff] %v1760_v0 }
 0x5c3   : > { %2461 = shalt.err (!%p2458_p3)
}
 0x5c4   : > { %s2462_s18 = scalar_lea.hbm %s3445_s1, 256  ;;  %s2466_s26 = scalar_lea.hbm %s3500_s12, 512 }
 0x5c5   : > { %p2463_p4 = scmp.ne.s32.totalorder %s3445_s1, %s2462_s18  ;;  %p2467_p9 = scmp.lt.u32.totalorder %s3445_s1, %s3500_s12 }
 0x5c6   : > { %p2468_p10 = scmp.lt.u32.totalorder %s2466_s26, %s2462_s18  ;;  %p2470_p12 = scmp.lt.u32.totalorder %s2462_s18, %s3445_s1 }
 0x5c7   : > { %p2464_p7 = pnand %p2463_p4, %p2621_p5 }
 0x5c8   : > { %p2469_p11 = por %p2468_p10, %p2467_p9 }
 0x5c9   : > { %p2465_p8 = pneg %p2464_p7 }
 0x5ca   : > { %p2471_p13 = por %p2470_p12, %p2469_p11 }
 0x5cc   : > { %p2472_p0 = pnand %p2471_p13, %p2465_p8 }
 0x5ce   : > { %2475 = shalt.err (!%p2472_p0)
}
 0x5cf   : > { %s2516_s28 = smov 128   ;;  %s2517_s25 = smov 8  }
 0x5d0   : > { %2382 = dma.vmem_to_hbm [thread:$0]  (%p2621_p5), %s3440_s20, 256, %s3445_s1, %s3447_s29, %s2516_s28, %s2516_s28, %s2517_s25  }
 0x5d1 PF: > { %p2388_p1 = scmp.ge.s32.totalorder %s2510_s24, 2  ;;  %s1794_s16 = sand.u32 1, %s2498_s21  }
 0x5d2   : > { %s1795_s19 = scalar_lea.sflag [#allocation3], %s1794_s16 }
 0x5d3   : > { %p2385_p2 = pnand %p2388_p1, %p2625_p6 }
 0x5d5   : > { %2493 = dma.done.wait (!%p2385_p2), %s1795_s19, 256  }
 0x5d6   : > { %2495 = vsyncadd (!%p2385_p2), %s1795_s19, 4294967040  ;;  %p22_p3 = scmp.ge.s32.totalorder %s2608_s27, 4   ;;  %s3512_s21 = smov %s2502_s22 }
 0x5d7   : > { %s3513_s22 = smov %s2506_s23  ;;  %s3514_s23 = smov %s2619_s30 }
 0x5d8   : > { %s3515_s24 = smov %s2608_s27  ;;  %24 = sbr.rel (!%p22_p3) target bundleno = 7 (0x7), region = 108 }
 0x5df   :  { %1800 = vsyncpa [#allocation3], 1 }
 0x5e0   :  { %1802 = vsyncpa [#allocation3 + $0x1], 1 }

</bundles_post_ra>
